<compile_context>
chip_gen: v7x
topology: tpu7x:2x2x1
jax: 0.10.0
libtpu: 0.0.40
codegen_flags: <defaults>
</compile_context>

<pallas_src>
import jax
import jax.numpy as jnp
from jax.experimental import pallas as pl
from jax.experimental.pallas import tpu as pltpu

# ------------------------- config (small, consistent with the module) --------
NUM_KERNELS = 8          # must equal 8*dim_multiplier for the residual add to type-check
NUM_CONV_LAYERS = 2
DIM_MULTIPLIER = 1
BOARD = 8 * DIM_MULTIPLIER
KSIZE = 15
PAD = 7
EPS = 1e-5
BATCH = 2

_INV_SQRT2 = 0.7071067811865476


def _round_up(a: int, b: int) -> int:
    return -(-a // b) * b


# ------------------------------ parameter setup (glue) -----------------------
def hollow_chess_mask(ksize: int) -> jnp.ndarray:
    # TODO(synk): `hollow_chess_kernel` is not defined in the provided source; this is a
    # deterministic stand-in that keeps queen-line + knight-move taps and zeroes the
    # ("hollow") center of the 15x15 kernel.
    c = ksize // 2
    dy = jnp.arange(ksize)[:, None] - c
    dx = jnp.arange(ksize)[None, :] - c
    queen = (dy == 0) | (dx == 0) | (dy == dx) | (dy == -dx)
    knight = (jnp.abs(dy) * jnp.abs(dx)) == 2
    center = (dy == 0) & (dx == 0)
    return ((queen | knight) & ~center).astype(jnp.float32)


def conv_weight_to_dense(w: jnp.ndarray, board: int) -> jnp.ndarray:
    """Exact dense operator T such that flatten(conv2d_same(x, w, pad=7)) == flatten(x) @ T."""
    c_out, c_in, kh, kw = w.shape
    idx = jnp.arange(board)
    d = idx[:, None] - idx[None, :] + kh // 2          # (in_pos, out_pos) -> kernel tap
    valid = (d >= 0) & (d < kh)
    dc = jnp.clip(d, 0, kh - 1)
    # gather -> [c_out, c_in, i, p, j, q]
    wg = w[:, :, dc[:, :, None, None], dc[None, None, :, :]]
    mask = (valid[:, :, None, None] & valid[None, None, :, :]).astype(w.dtype)
    wg = wg * mask[None, None]
    t = jnp.transpose(wg, (1, 2, 4, 0, 3, 5))          # [c_in, i, j, c_out, p, q]
    return t.reshape(c_in * board * board, c_out * board * board)


def init_params(key, num_kernels, num_conv_layers, dim_multiplier):
    board = 8 * dim_multiplier
    c_out = 8 * dim_multiplier
    mask = hollow_chess_mask(KSIZE)
    params = []
    for layer in range(num_conv_layers):
        key, kw, kb, kg, kbe = jax.random.split(key, 5)
        p = {}
        if layer > 0:
            p["gamma"] = 1.0 + 0.1 * jax.random.normal(kg, (num_kernels, board, board), jnp.float32)
            p["beta"] = 0.1 * jax.random.normal(kbe, (num_kernels, board, board), jnp.float32)
        w = 0.05 * jax.random.normal(kw, (c_out, num_kernels, KSIZE, KSIZE), jnp.float32)
        p["w"] = w * mask[None, None]
        p["b"] = 0.02 * jax.random.normal(kb, (c_out,), jnp.float32)
        params.append(p)
    return params


# --------------------------------- Pallas kernel -----------------------------
def _gelu_exact(x):
    # matches nn.GELU() default (erf-based); runs in f32 on the VPU
    return 0.5 * x * (1.0 + jax.lax.erf(x * _INV_SQRT2))


def make_block_kernel(num_conv_layers: int):
    # ref order: x_tile, packed_affine_vecs, T_0 .. T_{L-1}, out
    def kernel(x_ref, vec_ref, *rest):
        t_refs = rest[:-1]
        o_ref = rest[-1]

        x = x_ref[...]                                   # [TB, N] f32
        vecs = vec_ref[...]                              # [3L-2, N] f32
        h = x
        for layer in range(num_conv_layers):
            if layer > 0:
                gamma = vecs[3 * layer - 2:3 * layer - 1, :]   # [1, N]
                beta = vecs[3 * layer - 1:3 * layer, :]        # [1, N]
                h = _gelu_exact(h)
                # LayerNorm over [C, H, W] == the whole flattened row (f32)
                mu = jnp.mean(h, axis=-1, keepdims=True)
                dcent = h - mu
                var = jnp.mean(dcent * dcent, axis=-1, keepdims=True)
                h = dcent * jax.lax.rsqrt(var + EPS) * gamma + beta
            b_row = 0 if layer == 0 else 3 * layer
            bias = vecs[b_row:b_row + 1, :]                    # [1, N]
            # bf16 x bf16 -> f32 accumulate on the MXU; bias add is the epilogue
            h = jnp.dot(h.astype(jnp.bfloat16), t_refs[layer][...],
                        preferred_element_type=jnp.float32) + bias
        o_ref[...] = h + x                                     # residual (f32)
    return kernel


def res_chess_conv_block(x, params, *, batch_tile=128):
    B, C, H, W = x.shape
    N = C * H * W
    L = len(params)
    x_flat = x.reshape(B, N).astype(jnp.float32)

    # Pad batch to a sublane multiple, then tile it (TB=128 once the batch is big
    # enough to feed the MXU; TB=8 for tiny batches like the test below).
    B8 = _round_up(B, 8)
    TB = min(batch_tile, B8)
    Bp = _round_up(B8, TB)
    x_pad = jnp.zeros((Bp, N), jnp.float32).at[:B].set(x_flat)

    # Pack all per-layer [N] affine vectors into ONE f32 array:
    #   row 0 = bias of layer 0; rows 3l-2, 3l-1, 3l = gamma, beta, bias of layer l>=1.
    rows = [jnp.repeat(params[0]["b"], H * W)]
    for l in range(1, L):
        rows.append(params[l]["gamma"].reshape(N))
        rows.append(params[l]["beta"].reshape(N))
        rows.append(jnp.repeat(params[l]["b"], H * W))
    vecs = jnp.stack(rows, axis=0).astype(jnp.float32)          # [3L-2, N]
    n_rows = vecs.shape[0]

    # Dense conv operators in bf16 (halves DMA bytes / VMEM; MXU runs at bf16 rate).
    ts = [conv_weight_to_dense(p["w"], H).astype(jnp.bfloat16) for p in params]

    grid = (Bp // TB,)
    in_specs = (
        [pl.BlockSpec((TB, N), lambda i: (i, 0)),               # batch tile (varies)
         pl.BlockSpec((n_rows, N), lambda i: (0, 0))]           # affine vecs (resident)
        + [pl.BlockSpec((N, N), lambda i: (0, 0)) for _ in ts]  # operators (resident)
    )
    out = pl.pallas_call(
        make_block_kernel(L),
        out_shape=jax.ShapeDtypeStruct((Bp, N), jnp.float32),
        grid=grid,
        in_specs=in_specs,
        out_specs=pl.BlockSpec((TB, N), lambda i: (i, 0)),
        compiler_params=pltpu.CompilerParams(
            dimension_semantics=("parallel",),                  # megacore splits batch tiles
            vmem_limit_bytes=32 * 1024 * 1024,
        ),
    )(x_pad, vecs, *ts)
    return out[:B].reshape(B, C, H, W)


# ------------------------------ pure-JAX reference ---------------------------
def reference(x, params):
    h = x
    for layer, p in enumerate(params):
        if layer > 0:
            h = _gelu_exact(h)
            mu = jnp.mean(h, axis=(1, 2, 3), keepdims=True)
            var = jnp.mean((h - mu) ** 2, axis=(1, 2, 3), keepdims=True)
            h = (h - mu) / jnp.sqrt(var + EPS) * p["gamma"][None] + p["beta"][None]
        h = jax.lax.conv_general_dilated(
            h, p["w"], window_strides=(1, 1), padding=[(PAD, PAD), (PAD, PAD)],
            dimension_numbers=("NCHW", "OIHW", "NCHW"),
            precision=jax.lax.Precision.HIGHEST,
        ) + p["b"][None, :, None, None]
    return h + x


if __name__ == "__main__":
    key = jax.random.PRNGKey(0)
    key, kx = jax.random.split(key)
    x = jax.random.normal(kx, (BATCH, NUM_KERNELS, BOARD, BOARD), jnp.float32)
    params = init_params(key, NUM_KERNELS, NUM_CONV_LAYERS, DIM_MULTIPLIER)

    out = res_chess_conv_block(x, params)
    out = jax.block_until_ready(out)

    ref = reference(x, params)
    # Tolerance sized for the bf16 MXU path: each output sums ~300 bf16 products per
    # conv layer (f32 accumulate), vs. an exact f32 reference.
    if not jnp.allclose(out, ref, rtol=1e-2, atol=1e-2):
        raise AssertionError(
            f"mismatch vs reference: max abs diff = {float(jnp.max(jnp.abs(out - ref)))}"
        )
    print("KERNEL_OK")
</pallas_src>

<mosaic_0001>
module attributes {stable_mosaic.version = 11 : i64} {
  func.func @kernel(%arg0: i32, %arg1: memref<8x512xf32, #tpu.memory_space<vmem>>, %arg2: memref<4x512xf32, #tpu.memory_space<vmem>>, %arg3: memref<512x512xbf16, #tpu.memory_space<vmem>>, %arg4: memref<512x512xbf16, #tpu.memory_space<vmem>>, %arg5: memref<8x512xf32, #tpu.memory_space<vmem>>) attributes {dimension_semantics = [#tpu.dimension_semantics<parallel>], iteration_bounds = array<i64: 1>, scalar_prefetch = 0 : i64, scratch_operands = 0 : i64, tpu.core_type = #tpu.core_type<tc>, window_params = [{transform_indices = @transform_0, window_bounds = array<i64: 8, 512>}, {pipeline_mode = #tpu.pipeline_mode<synchronous>, transform_indices = @transform_1, window_bounds = array<i64: 4, 512>}, {pipeline_mode = #tpu.pipeline_mode<synchronous>, transform_indices = @transform_2, window_bounds = array<i64: 512, 512>}, {pipeline_mode = #tpu.pipeline_mode<synchronous>, transform_indices = @transform_3, window_bounds = array<i64: 512, 512>}, {transform_indices = @transform_4, window_bounds = array<i64: 8, 512>}]} {
    %c0 = arith.constant 0 : index
    %c0_0 = arith.constant 0 : index
    %0 = vector.load %arg1[%c0, %c0_0] : memref<8x512xf32, #tpu.memory_space<vmem>>, vector<8x512xf32>
    %c0_1 = arith.constant 0 : index
    %c0_2 = arith.constant 0 : index
    %1 = vector.load %arg2[%c0_1, %c0_2] : memref<4x512xf32, #tpu.memory_space<vmem>>, vector<4x512xf32>
    %2 = vector.extract_strided_slice %1 {offsets = [0, 0], sizes = [1, 512], strides = [1, 1]} : vector<4x512xf32> to vector<1x512xf32>
    %3 = arith.truncf %0 : vector<8x512xf32> to vector<8x512xbf16>
    %c0_3 = arith.constant 0 : index
    %c0_4 = arith.constant 0 : index
    %4 = vector.load %arg3[%c0_3, %c0_4] : memref<512x512xbf16, #tpu.memory_space<vmem>>, vector<512x512xbf16>
    %cst = arith.constant dense<0.000000e+00> : vector<8x512xf32>
    %5 = tpu.matmul %3, %4, %cst {dimension_numbers = #tpu.dot_dimension_numbers<[1], [0], [0], [1], [0, 0, 1, 1], [], []>} : vector<8x512xbf16>, vector<512x512xbf16>, vector<8x512xf32> -> vector<8x512xf32>
    %6 = vector.broadcast %2 : vector<1x512xf32> to vector<8x512xf32>
    %7 = arith.addf %5, %6 : vector<8x512xf32>
    %8 = vector.extract_strided_slice %1 {offsets = [1, 0], sizes = [1, 512], strides = [1, 1]} : vector<4x512xf32> to vector<1x512xf32>
    %9 = vector.extract_strided_slice %1 {offsets = [2, 0], sizes = [1, 512], strides = [1, 1]} : vector<4x512xf32> to vector<1x512xf32>
    %cst_5 = arith.constant 5.000000e-01 : f32
    %10 = vector.broadcast %cst_5 : f32 to vector<8x512xf32>
    %11 = arith.mulf %10, %7 : vector<8x512xf32>
    %cst_6 = arith.constant 0.707106769 : f32
    %12 = vector.broadcast %cst_6 : f32 to vector<8x512xf32>
    %13 = arith.mulf %7, %12 : vector<8x512xf32>
    %14 = math.erf %13 : vector<8x512xf32>
    %cst_7 = arith.constant 1.000000e+00 : f32
    %15 = vector.broadcast %cst_7 : f32 to vector<8x512xf32>
    %16 = arith.addf %15, %14 : vector<8x512xf32>
    %17 = arith.mulf %11, %16 : vector<8x512xf32>
    %cst_8 = arith.constant dense<0.000000e+00> : vector<8xf32>
    %18 = vector.multi_reduction <add>, %17, %cst_8 [1] : vector<8x512xf32> to vector<8xf32>
    %19 = vector.shape_cast %18 : vector<8xf32> to vector<8x1xf32>
    %cst_9 = arith.constant 5.120000e+02 : f32
    %20 = vector.broadcast %cst_9 : f32 to vector<8x1xf32>
    %21 = arith.divf %19, %20 : vector<8x1xf32>
    %22 = vector.broadcast %21 : vector<8x1xf32> to vector<8x512xf32>
    %23 = arith.subf %17, %22 : vector<8x512xf32>
    %24 = arith.mulf %23, %23 : vector<8x512xf32>
    %cst_10 = arith.constant dense<0.000000e+00> : vector<8xf32>
    %25 = vector.multi_reduction <add>, %24, %cst_10 [1] : vector<8x512xf32> to vector<8xf32>
    %26 = vector.shape_cast %25 : vector<8xf32> to vector<8x1xf32>
    %cst_11 = arith.constant 5.120000e+02 : f32
    %27 = vector.broadcast %cst_11 : f32 to vector<8x1xf32>
    %28 = arith.divf %26, %27 : vector<8x1xf32>
    %cst_12 = arith.constant 9.99999974E-6 : f32
    %29 = vector.broadcast %cst_12 : f32 to vector<8x1xf32>
    %30 = arith.addf %28, %29 : vector<8x1xf32>
    %31 = math.rsqrt %30 : vector<8x1xf32>
    %32 = vector.broadcast %31 : vector<8x1xf32> to vector<8x512xf32>
    %33 = arith.mulf %23, %32 : vector<8x512xf32>
    %34 = vector.broadcast %8 : vector<1x512xf32> to vector<8x512xf32>
    %35 = arith.mulf %33, %34 : vector<8x512xf32>
    %36 = vector.broadcast %9 : vector<1x512xf32> to vector<8x512xf32>
    %37 = arith.addf %35, %36 : vector<8x512xf32>
    %38 = vector.extract_strided_slice %1 {offsets = [3, 0], sizes = [1, 512], strides = [1, 1]} : vector<4x512xf32> to vector<1x512xf32>
    %39 = arith.truncf %37 : vector<8x512xf32> to vector<8x512xbf16>
    %c0_13 = arith.constant 0 : index
    %c0_14 = arith.constant 0 : index
    %40 = vector.load %arg4[%c0_13, %c0_14] : memref<512x512xbf16, #tpu.memory_space<vmem>>, vector<512x512xbf16>
    %cst_15 = arith.constant dense<0.000000e+00> : vector<8x512xf32>
    %41 = tpu.matmul %39, %40, %cst_15 {dimension_numbers = #tpu.dot_dimension_numbers<[1], [0], [0], [1], [0, 0, 1, 1], [], []>} : vector<8x512xbf16>, vector<512x512xbf16>, vector<8x512xf32> -> vector<8x512xf32>
    %42 = vector.broadcast %38 : vector<1x512xf32> to vector<8x512xf32>
    %43 = arith.addf %41, %42 : vector<8x512xf32>
    %44 = arith.addf %43, %0 : vector<8x512xf32>
    %c0_16 = arith.constant 0 : index
    %c0_17 = arith.constant 0 : index
    %45 = vector.load %arg5[%c0_16, %c0_17] : memref<8x512xf32, #tpu.memory_space<vmem>>, vector<8x512xf32>
    tpu.vector_store %arg5[%c0_16, %c0_17], %44 {strides = array<i32>} : memref<8x512xf32, #tpu.memory_space<vmem>>, vector<8x512xf32>,
    return
  }
  func.func @transform_0(%arg0: i32) -> (i32, i32) {
    %c0_i32 = arith.constant 0 : i32
    %c0_i32_0 = arith.constant 0 : i32
    return %arg0, %c0_i32 : i32, i32
  }
  func.func @transform_1(%arg0: i32) -> (i32, i32) {
    %c0_i32 = arith.constant 0 : i32
    %c0_i32_0 = arith.constant 0 : i32
    %c0_i32_1 = arith.constant 0 : i32
    return %c0_i32, %c0_i32_0 : i32, i32
  }
  func.func @transform_2(%arg0: i32) -> (i32, i32) {
    %c0_i32 = arith.constant 0 : i32
    %c0_i32_0 = arith.constant 0 : i32
    %c0_i32_1 = arith.constant 0 : i32
    return %c0_i32, %c0_i32_0 : i32, i32
  }
  func.func @transform_3(%arg0: i32) -> (i32, i32) {
    %c0_i32 = arith.constant 0 : i32
    %c0_i32_0 = arith.constant 0 : i32
    %c0_i32_1 = arith.constant 0 : i32
    return %c0_i32, %c0_i32_0 : i32, i32
  }
  func.func @transform_4(%arg0: i32) -> (i32, i32) {
    %c0_i32 = arith.constant 0 : i32
    %c0_i32_0 = arith.constant 0 : i32
    return %arg0, %c0_i32 : i32, i32
  }
}

</mosaic_0001>

<bundles_post_ra>
// kernel: tpu_custom_call.1
= control target key start
LH: loop header
LB: loop body
LE: loop exit
PB: predicated region body
PF: predicated region fallthrough
CT: control target
= control target key end

     0   :  { %9 = vsyncpa [#allocation3], 0  ;;  %s3134_s0 = inlined_call_operand.hbm [shape: f32[8,512], index: 0, kind: input, shape index: {}]   ;;  %s3135_s1 = inlined_call_operand.hbm [shape: f32[4,512], index: 1, kind: input, shape index: {}]   ;;  %s3136_s2 = inlined_call_operand.hbm [shape: bf16[512,512], index: 2, kind: input, shape index: {}]   ;;  %s3137_s3 = inlined_call_operand.hbm [shape: bf16[512,512], index: 3, kind: input, shape index: {}]   ;;  %s3138_s4 = inlined_call_operand.hbm [shape: f32[8,512], index: 4, kind: output, shape index: {}]  }
   0x1   :  { %10 = vsyncpa [#allocation6], 0 }
   0x2   :  { %11 = vsyncpa [#allocation9], 0 }
   0x3   :  { %12 = vsyncpa [#allocation4], 0  ;;  %s2963_s15 = smov [#allocation5]   ;;  %s2964_s17 = smov [#allocation2]  }
   0x4   :  { %s29_s16 = sshll.u32 %s2963_s15, 4  ;;  %s19_s18 = sshll.u32 %s2964_s17, 4  ;;  %s30_s16 = int_to_ptr.vmem [resolvable:$true] %s29_s16  ;;  %s20_s18 = int_to_ptr.vmem [resolvable:$true] %s19_s18 }
   0x5   :  { %s2845_s21 = scalar_lea.hbm %s3135_s1, 256 }
   0x6   :  { %p2846_p0 = scmp.ne.s32.totalorder %s3135_s1, %s2845_s21  ;;  %p2849_p1 = scmp.lt.u32.totalorder %s2845_s21, %s3135_s1 }
   0x8   :  { %p2851_p2 = pnand %p2849_p1, %p2846_p0 }
   0xa   :  { %2854 = shalt.err (!%p2851_p2)
}
   0xb   :  { %s2855_s26 = scalar_lea.vmem %s30_s16, 256  ;;  %p2860_p4 = scmp.lt.s32.totalorder %s30_s16, %s30_s16 }
   0xc   :  { %p2856_p3 = scmp.ne.s32.totalorder %s30_s16, %s2855_s26  ;;  %p2861_p5 = scmp.lt.s32.totalorder %s2855_s26, %s2855_s26 }
   0xe   :  { %p2862_p6 = por %p2861_p5, %p2860_p4 }
  0x10   :  { %p2863_p7 = pnand %p2862_p6, %p2856_p3 }
  0x12   :  { %2866 = shalt.err (!%p2863_p7)
}
  0x13   :  { %32 = dma.hbm_to_vmem [thread:$0]  %s3135_s1, 256, %s30_s16, [#allocation6]  }
  0x14   :  { %s2867_s5 = scalar_lea.hbm %s3134_s0, 512 }
  0x15   :  { %p2868_p8 = scmp.ne.s32.totalorder %s3134_s0, %s2867_s5  ;;  %p2871_p9 = scmp.lt.u32.totalorder %s2867_s5, %s3134_s0 }
  0x17   :  { %p2873_p10 = pnand %p2871_p9, %p2868_p8 }
  0x19   :  { %2876 = shalt.err (!%p2873_p10)
}
  0x1a   :  { %s2877_s10 = scalar_lea.vmem %s20_s18, 512  ;;  %p2882_p12 = scmp.lt.s32.totalorder %s20_s18, %s20_s18 }
  0x1b   :  { %p2878_p11 = scmp.ne.s32.totalorder %s20_s18, %s2877_s10  ;;  %p2883_p13 = scmp.lt.s32.totalorder %s2877_s10, %s2877_s10 }
  0x1d   :  { %p2884_p0 = por %p2883_p13, %p2882_p12 }
  0x1f   :  { %p2885_p1 = pnand %p2884_p0, %p2878_p11 }
  0x21   :  { %2888 = shalt.err (!%p2885_p1)
}
  0x22   :  { %22 = dma.hbm_to_vmem [thread:$0]  %s3134_s0, 512, %s20_s18, [#allocation3]  }
  0x23   :  { %s2965_s12 = smov [#allocation7]   ;;  %s2889_s16 = scalar_lea.hbm %s3136_s2, 16384 }
  0x24   :  { %s38_s13 = sshll.u32 %s2965_s12, 4  ;;  %p2890_p2 = scmp.ne.s32.totalorder %s3136_s2, %s2889_s16  ;;  %s39_s13 = int_to_ptr.vmem [resolvable:$true] %s38_s13 }
  0x25   :  { %p2893_p3 = scmp.lt.u32.totalorder %s2889_s16, %s3136_s2 }
  0x27   :  { %p2895_p4 = pnand %p2893_p3, %p2890_p2 }
  0x29   :  { %2898 = shalt.err (!%p2895_p4)
}
  0x2a   :  { %s2899_s22 = scalar_lea.vmem %s39_s13, 16384  ;;  %p2904_p6 = scmp.lt.s32.totalorder %s39_s13, %s39_s13 }
  0x2b   :  { %p2900_p5 = scmp.ne.s32.totalorder %s39_s13, %s2899_s22  ;;  %p2905_p7 = scmp.lt.s32.totalorder %s2899_s22, %s2899_s22 }
  0x2d   :  { %p2906_p8 = por %p2905_p7, %p2904_p6 }
  0x2f   :  { %p2907_p9 = pnand %p2906_p8, %p2900_p5 }
  0x31   :  { %2910 = shalt.err (!%p2907_p9)
}
  0x32   :  { %s2966_s0 = smov 256   ;;  %s2967_s18 = smov 16  }
  0x33   :  { %44 = dma.hbm_to_vmem [thread:$0]  %s3136_s2, 16384, %s39_s13, [#allocation6], %s2966_s0, %s2966_s0, %s2967_s18  }
  0x34   :  { %s2968_s25 = smov [#allocation8]   ;;  %s2911_s29 = scalar_lea.hbm %s3137_s3, 16384 }
  0x35   :  { %s50_s26 = sshll.u32 %s2968_s25, 4  ;;  %p2912_p10 = scmp.ne.s32.totalorder %s3137_s3, %s2911_s29  ;;  %s51_s26 = int_to_ptr.vmem [resolvable:$true] %s50_s26 }
  0x36   :  { %p2915_p11 = scmp.lt.u32.totalorder %s2911_s29, %s3137_s3 }
  0x38   :  { %p2917_p12 = pnand %p2915_p11, %p2912_p10 }
  0x3a   :  { %2920 = shalt.err (!%p2917_p12)
}
  0x3b   :  { %s2921_s8 = scalar_lea.vmem %s51_s26, 16384  ;;  %p2926_p0 = scmp.lt.s32.totalorder %s51_s26, %s51_s26 }
  0x3c   :  { %p2922_p13 = scmp.ne.s32.totalorder %s51_s26, %s2921_s8  ;;  %p2927_p1 = scmp.lt.s32.totalorder %s2921_s8, %s2921_s8 }
  0x3e   :  { %p2928_p2 = por %p2927_p1, %p2926_p0 }
  0x40   :  { %p2929_p3 = pnand %p2928_p2, %p2922_p13 }
  0x42   :  { %2932 = shalt.err (!%p2929_p3)
}
  0x43   :  { %56 = dma.hbm_to_vmem [thread:$0]  %s3137_s3, 16384, %s51_s26, [#allocation9], %s2966_s0, %s2966_s0, %s2967_s18  }
  0x44   :  { %2955 = dma.done.wait [#allocation3], 512  }
  0x45   :  { %2956 = vsyncadd [#allocation3], 4294966784 }
  0x46   :  { %2957 = dma.done.wait [#allocation6], 16640  }
  0x47   :  { %2958 = vsyncadd [#allocation6], 4294950656 }
  0x48   :  { %2959 = dma.done.wait [#allocation9], 16384  }
  0x49   :  { %2960 = vsyncadd [#allocation9], 4294950912  ;;  %v2448_v0 = vld [vmem:[#allocation7 + $0x4] ss:$16 sps:$4 sm:$0xff]   ;;  %v2450_v1 = vld [vmem:[#allocation7 + $0xc] ss:$16 sps:$4 sm:$0xff]  }
  0x4a   :  { %885 = vmatprep.subr.bf16.mxu0 %v2448_v0  ;;  %v2452_v2 = vld [vmem:[#allocation7] ss:$16 sps:$4 sm:$0xff]   ;;  %v2453_v3 = vld [vmem:[#allocation7 + $0x8] ss:$16 sps:$4 sm:$0xff]   ;;  %967 = vmatprep.subr.bf16.mxu1 %v2450_v1  ;;  %v2454_v4 = vld [vmem:[#allocation7 + $0x24] ss:$16 sps:$4 sm:$0xff]  }
  0x4b   :  { %886 = vmatpush1.bf16.msra.mxu0 %v2452_v2  ;;  %968 = vmatpush1.bf16.msra.mxu1 %v2453_v3  ;;  %v2456_v5 = vld [vmem:[#allocation7 + $0x2c] ss:$16 sps:$4 sm:$0xff]   ;;  %v2458_v6 = vld [vmem:[#allocation7 + $0x20] ss:$16 sps:$4 sm:$0xff]   ;;  %v2459_v7 = vld [vmem:[#allocation7 + $0x28] ss:$16 sps:$4 sm:$0xff]  }
  0x4c   :  { %887 = vmatprep.subr.bf16.mxu0 %v2454_v4  ;;  %969 = vmatprep.subr.bf16.mxu1 %v2456_v5  ;;  %v2460_v8 = vld [vmem:[#allocation7 + $0x44] ss:$16 sps:$4 sm:$0xff]   ;;  %v2462_v9 = vld [vmem:[#allocation7 + $0x4c] ss:$16 sps:$4 sm:$0xff]   ;;  %v2464_v10 = vld [vmem:[#allocation7 + $0x40] ss:$16 sps:$4 sm:$0xff]  }
  0x4d   :  { %v2465_v11 = vld [vmem:[#allocation7 + $0x48] ss:$16 sps:$4 sm:$0xff]   ;;  %v2466_v12 = vld [vmem:[#allocation7 + $0x64] ss:$16 sps:$4 sm:$0xff]   ;;  %v2468_v13 = vld [vmem:[#allocation7 + $0x6c] ss:$16 sps:$4 sm:$0xff]  }
  0x4e   :  { %v2470_v14 = vld [vmem:[#allocation7 + $0x60] ss:$16 sps:$4 sm:$0xff]   ;;  %v2471_v15 = vld [vmem:[#allocation7 + $0x68] ss:$16 sps:$4 sm:$0xff]   ;;  %v2472_v16 = vld [vmem:[#allocation7 + $0x84] ss:$16 sps:$4 sm:$0xff]  }
  0x4f   :  { %888 = vmatpush1.bf16.msra.mxu0 %v2458_v6  ;;  %970 = vmatpush1.bf16.msra.mxu1 %v2459_v7  ;;  %v2474_v17 = vld [vmem:[#allocation7 + $0x8c] ss:$16 sps:$4 sm:$0xff]   ;;  %v2476_v18 = vld [vmem:[#allocation7 + $0x80] ss:$16 sps:$4 sm:$0xff]   ;;  %v2477_v19 = vld [vmem:[#allocation7 + $0x88] ss:$16 sps:$4 sm:$0xff]  }
  0x50   :  { %889 = vmatprep.subr.bf16.mxu0 %v2460_v8  ;;  %971 = vmatprep.subr.bf16.mxu1 %v2462_v9  ;;  %v2478_v20 = vld [vmem:[#allocation7 + $0xa4] ss:$16 sps:$4 sm:$0xff]   ;;  %v2480_v21 = vld [vmem:[#allocation7 + $0xac] ss:$16 sps:$4 sm:$0xff]   ;;  %v2482_v22 = vld [vmem:[#allocation7 + $0xa0] ss:$16 sps:$4 sm:$0xff]  }
  0x51   :  { %v2483_v23 = vld [vmem:[#allocation7 + $0xa8] ss:$16 sps:$4 sm:$0xff]   ;;  %v2484_v24 = vld [vmem:[#allocation7 + $0xc4] ss:$16 sps:$4 sm:$0xff]   ;;  %v2486_v25 = vld [vmem:[#allocation7 + $0xcc] ss:$16 sps:$4 sm:$0xff]  }
  0x52   :  { %v2488_v26 = vld [vmem:[#allocation7 + $0xc0] ss:$16 sps:$4 sm:$0xff]   ;;  %v2489_v27 = vld [vmem:[#allocation7 + $0xc8] ss:$16 sps:$4 sm:$0xff]   ;;  %v2490_v28 = vld [vmem:[#allocation7 + $0xe4] ss:$16 sps:$4 sm:$0xff]  }
  0x53   :  { %890 = vmatpush1.bf16.msra.mxu0 %v2464_v10  ;;  %972 = vmatpush1.bf16.msra.mxu1 %v2465_v11  ;;  %v2492_v29 = vld [vmem:[#allocation7 + $0xec] ss:$16 sps:$4 sm:$0xff]   ;;  %v2494_v30 = vld [vmem:[#allocation7 + $0xe0] ss:$16 sps:$4 sm:$0xff]   ;;  %v2495_v31 = vld [vmem:[#allocation7 + $0xe8] ss:$16 sps:$4 sm:$0xff]  }
  0x54   :  { %891 = vmatprep.subr.bf16.mxu0 %v2466_v12  ;;  %973 = vmatprep.subr.bf16.mxu1 %v2468_v13  ;;  %v2496_v32 = vld [vmem:[#allocation7 + $0x104] ss:$16 sps:$4 sm:$0xff]   ;;  %v2498_v33 = vld [vmem:[#allocation7 + $0x10c] ss:$16 sps:$4 sm:$0xff]   ;;  %v2500_v34 = vld [vmem:[#allocation7 + $0x100] ss:$16 sps:$4 sm:$0xff]  }
  0x55   :  { %v2501_v35 = vld [vmem:[#allocation7 + $0x108] ss:$16 sps:$4 sm:$0xff]   ;;  %v2502_v36 = vld [vmem:[#allocation7 + $0x124] ss:$16 sps:$4 sm:$0xff]   ;;  %v2504_v37 = vld [vmem:[#allocation7 + $0x12c] ss:$16 sps:$4 sm:$0xff]  }
  0x56   :  { %v2506_v38 = vld [vmem:[#allocation7 + $0x120] ss:$16 sps:$4 sm:$0xff]   ;;  %v2507_v39 = vld [vmem:[#allocation7 + $0x128] ss:$16 sps:$4 sm:$0xff]   ;;  %v2508_v40 = vld [vmem:[#allocation7 + $0x144] ss:$16 sps:$4 sm:$0xff]  }
  0x57   :  { %892 = vmatpush1.bf16.msra.mxu0 %v2470_v14  ;;  %974 = vmatpush1.bf16.msra.mxu1 %v2471_v15  ;;  %v2510_v41 = vld [vmem:[#allocation7 + $0x14c] ss:$16 sps:$4 sm:$0xff]   ;;  %v2512_v42 = vld [vmem:[#allocation7 + $0x140] ss:$16 sps:$4 sm:$0xff]   ;;  %v2513_v43 = vld [vmem:[#allocation7 + $0x148] ss:$16 sps:$4 sm:$0xff]  }
  0x58   :  { %893 = vmatprep.subr.bf16.mxu0 %v2472_v16  ;;  %975 = vmatprep.subr.bf16.mxu1 %v2474_v17  ;;  %v2514_v44 = vld [vmem:[#allocation7 + $0x164] ss:$16 sps:$4 sm:$0xff]   ;;  %v2516_v45 = vld [vmem:[#allocation7 + $0x16c] ss:$16 sps:$4 sm:$0xff]   ;;  %v2518_v47 = vld [vmem:[#allocation7 + $0x160] ss:$16 sps:$4 sm:$0xff]  }
  0x59   :  { %v70_v46 = vld [vmem:[#allocation2 + $0x8] sm:$0xff]  ;;  %v2520_v50 = vld [vmem:[#allocation7 + $0x184] ss:$16 sps:$4 sm:$0xff]   ;;  %v2524_v52 = vld [vmem:[#allocation7 + $0x180] ss:$16 sps:$4 sm:$0xff]   ;;  %s2969_s3 = smov [#allocation10]  }
  0x5a   :  { %v76_v48 = vpack.c.bf16 %v70_v46, %v70_v46  ;;  %v2519_v49 = vld [vmem:[#allocation7 + $0x168] ss:$16 sps:$4 sm:$0xff]   ;;  %v2522_v51 = vld [vmem:[#allocation7 + $0x18c] ss:$16 sps:$4 sm:$0xff]   ;;  %v2526_v54 = vld [vmem:[#allocation7 + $0x1a4] ss:$16 sps:$4 sm:$0xff]  }
  0x5b   :  { %894 = vmatpush1.bf16.msra.mxu0 %v2476_v18  ;;  %976 = vmatpush1.bf16.msra.mxu1 %v2477_v19  ;;  %v2525_v53 = vld [vmem:[#allocation7 + $0x188] ss:$16 sps:$4 sm:$0xff]   ;;  %v2528_v55 = vld [vmem:[#allocation7 + $0x1ac] ss:$16 sps:$4 sm:$0xff]   ;;  %v2530_v56 = vld [vmem:[#allocation7 + $0x1a0] ss:$16 sps:$4 sm:$0xff]  }
  0x5c   :  { %895 = vmatprep.subr.bf16.mxu0 %v2478_v20  ;;  %977 = vmatprep.subr.bf16.mxu1 %v2480_v21  ;;  %v2531_v57 = vld [vmem:[#allocation7 + $0x1a8] ss:$16 sps:$4 sm:$0xff]   ;;  %v2532_v58 = vld [vmem:[#allocation7 + $0x1c4] ss:$16 sps:$4 sm:$0xff]   ;;  %v2534_v59 = vld [vmem:[#allocation7 + $0x1cc] ss:$16 sps:$4 sm:$0xff]  }
  0x5d   :  { %917 = vmatprep.mubr.bf16.mxu0 %v76_v48  ;;  %999 = vmatprep.mubr.bf16.mxu1 %v76_v48  ;;  %v2536_v60 = vld [vmem:[#allocation7 + $0x1c0] ss:$16 sps:$4 sm:$0xff]   ;;  %v2537_v61 = vld [vmem:[#allocation7 + $0x1c8] ss:$16 sps:$4 sm:$0xff]   ;;  %v2538_v62 = vld [vmem:[#allocation7 + $0x1e4] ss:$16 sps:$4 sm:$0xff]  }
  0x5e   :  { %v2540_v63 = vld [vmem:[#allocation7 + $0x1ec] ss:$16 sps:$4 sm:$0xff]   ;;  %v2542_v0 = vld [vmem:[#allocation7 + $0x1e0] ss:$16 sps:$4 sm:$0xff]   ;;  %v2543_v1 = vld [vmem:[#allocation7 + $0x1e8] ss:$16 sps:$4 sm:$0xff]  }
  0x5f   :  { %896 = vmatpush1.bf16.msra.mxu0 %v2482_v22  ;;  %978 = vmatpush1.bf16.msra.mxu1 %v2483_v23  ;;  %v69_v2 = vld [vmem:[#allocation2] sm:$0xff]  ;;  %v2549_v4 = vld [vmem:[#allocation7 + $0x20c] ss:$16 sps:$4 sm:$0xff]   ;;  %v2547_v7 = vld [vmem:[#allocation7 + $0x208] ss:$16 sps:$4 sm:$0xff]   ;;  %s2162_s10 = sshll.u32 %s2969_s3, 4  ;;  %s2163_s10 = int_to_ptr.vmem [resolvable:$true] %s2162_s10 }
  0x60   :  { %897 = vmatprep.subr.bf16.mxu0 %v2484_v24  ;;  %979 = vmatprep.subr.bf16.mxu1 %v2486_v25  ;;  %v2546_v3 = vld [vmem:[#allocation7 + $0x204] ss:$16 sps:$4 sm:$0xff]   ;;  %v75_v5 = vpack.c.bf16 %v69_v2, %v69_v2  ;;  %v2544_v6 = vld [vmem:[#allocation7 + $0x200] ss:$16 sps:$4 sm:$0xff]   ;;  %v2555_v9 = vld [vmem:[#allocation7 + $0x22c] ss:$16 sps:$4 sm:$0xff]   ;;  %p2938_p5 = scmp.lt.s32.totalorder %s2163_s10, %s2163_s10 }
  0x61   :  { %v2552_v8 = vld [vmem:[#allocation7 + $0x224] ss:$16 sps:$4 sm:$0xff]   ;;  %v2550_v10 = vld [vmem:[#allocation7 + $0x220] ss:$16 sps:$4 sm:$0xff]   ;;  %v2553_v11 = vld [vmem:[#allocation7 + $0x228] ss:$16 sps:$4 sm:$0xff]  }
  0x62   :  { %v2558_v12 = vld [vmem:[#allocation7 + $0x244] ss:$16 sps:$4 sm:$0xff]   ;;  %v2561_v13 = vld [vmem:[#allocation7 + $0x24c] ss:$16 sps:$4 sm:$0xff]   ;;  %v2556_v14 = vld [vmem:[#allocation7 + $0x240] ss:$16 sps:$4 sm:$0xff]  }
  0x63   :  { %898 = vmatpush1.bf16.msra.mxu0 %v2488_v26  ;;  %980 = vmatpush1.bf16.msra.mxu1 %v2489_v27  ;;  %v2559_v15 = vld [vmem:[#allocation7 + $0x248] ss:$16 sps:$4 sm:$0xff]   ;;  %v2564_v16 = vld [vmem:[#allocation7 + $0x264] ss:$16 sps:$4 sm:$0xff]   ;;  %v2567_v17 = vld [vmem:[#allocation7 + $0x26c] ss:$16 sps:$4 sm:$0xff]  }
  0x64   :  { %899 = vmatprep.subr.bf16.mxu0 %v2490_v28  ;;  %981 = vmatprep.subr.bf16.mxu1 %v2492_v29  ;;  %v2562_v18 = vld [vmem:[#allocation7 + $0x260] ss:$16 sps:$4 sm:$0xff]   ;;  %v2565_v19 = vld [vmem:[#allocation7 + $0x268] ss:$16 sps:$4 sm:$0xff]   ;;  %v2570_v20 = vld [vmem:[#allocation7 + $0x284] ss:$16 sps:$4 sm:$0xff]  }
  0x65   :  { %v2573_v21 = vld [vmem:[#allocation7 + $0x28c] ss:$16 sps:$4 sm:$0xff]   ;;  %v2568_v22 = vld [vmem:[#allocation7 + $0x280] ss:$16 sps:$4 sm:$0xff]   ;;  %v2571_v23 = vld [vmem:[#allocation7 + $0x288] ss:$16 sps:$4 sm:$0xff]  }
  0x66   :  { %v2576_v24 = vld [vmem:[#allocation7 + $0x2a4] ss:$16 sps:$4 sm:$0xff]   ;;  %v2579_v25 = vld [vmem:[#allocation7 + $0x2ac] ss:$16 sps:$4 sm:$0xff]   ;;  %v2574_v26 = vld [vmem:[#allocation7 + $0x2a0] ss:$16 sps:$4 sm:$0xff]  }
  0x67   :  { %900 = vmatpush1.bf16.msra.mxu0 %v2494_v30  ;;  %982 = vmatpush1.bf16.msra.mxu1 %v2495_v31  ;;  %v2577_v27 = vld [vmem:[#allocation7 + $0x2a8] ss:$16 sps:$4 sm:$0xff]   ;;  %v2582_v28 = vld [vmem:[#allocation7 + $0x2c4] ss:$16 sps:$4 sm:$0xff]   ;;  %v2585_v29 = vld [vmem:[#allocation7 + $0x2cc] ss:$16 sps:$4 sm:$0xff]  }
  0x68   :  { %901 = vmatprep.subr.bf16.mxu0 %v2496_v32  ;;  %983 = vmatprep.subr.bf16.mxu1 %v2498_v33  ;;  %v2580_v30 = vld [vmem:[#allocation7 + $0x2c0] ss:$16 sps:$4 sm:$0xff]   ;;  %v2583_v31 = vld [vmem:[#allocation7 + $0x2c8] ss:$16 sps:$4 sm:$0xff]   ;;  %v2588_v33 = vld [vmem:[#allocation7 + $0x2e4] ss:$16 sps:$4 sm:$0xff]  }
  0x69   :  { %v72_v32 = vld [vmem:[#allocation2 + $0x18] sm:$0xff]  ;;  %v2606_v46 = vld [vmem:[#allocation7 + $0x344] ss:$16 sps:$4 sm:$0xff]   ;;  %v2604_v48 = vld [vmem:[#allocation7 + $0x340] ss:$16 sps:$4 sm:$0xff]   ;;  %s2933_s1 = scalar_lea.vmem %s2163_s10, 512 }
  0x6a   :  { %v2636_v2 = vld [vmem:[#allocation7 + $0x3e4] ss:$16 sps:$4 sm:$0xff]   ;;  %p2934_p4 = scmp.ne.s32.totalorder %s2163_s10, %s2933_s1  ;;  %p2939_p6 = scmp.lt.s32.totalorder %s2933_s1, %s2933_s1 }
  0x6b   :  { %902 = vmatpush1.bf16.msra.mxu0 %v2500_v34  ;;  %984 = vmatpush1.bf16.msra.mxu1 %v2501_v35  ;;  %v2591_v34 = vld [vmem:[#allocation7 + $0x2ec] ss:$16 sps:$4 sm:$0xff]   ;;  %v78_v35 = vpack.c.bf16 %v72_v32, %v72_v32 }
  0x6c   :  { %903 = vmatprep.subr.bf16.mxu0 %v2502_v36  ;;  %985 = vmatprep.subr.bf16.mxu1 %v2504_v37  ;;  %v2586_v36 = vld [vmem:[#allocation7 + $0x2e0] ss:$16 sps:$4 sm:$0xff]   ;;  %v2589_v37 = vld [vmem:[#allocation7 + $0x2e8] ss:$16 sps:$4 sm:$0xff]   ;;  %p2940_p7 = por %p2939_p6, %p2938_p5 }
  0x6e   :  { %p2941_p8 = pnand %p2940_p7, %p2934_p4 }
  0x6f   :  { %904 = vmatpush1.bf16.msra.mxu0 %v2506_v38  ;;  %986 = vmatpush1.bf16.msra.mxu1 %v2507_v39  ;;  %v2594_v38 = vld [vmem:[#allocation7 + $0x304] ss:$16 sps:$4 sm:$0xff]   ;;  %v2597_v39 = vld [vmem:[#allocation7 + $0x30c] ss:$16 sps:$4 sm:$0xff]  }
  0x70   :  { %905 = vmatprep.subr.bf16.mxu0 %v2508_v40  ;;  %987 = vmatprep.subr.bf16.mxu1 %v2510_v41  ;;  %v2592_v40 = vld [vmem:[#allocation7 + $0x300] ss:$16 sps:$4 sm:$0xff]   ;;  %v2595_v41 = vld [vmem:[#allocation7 + $0x308] ss:$16 sps:$4 sm:$0xff]  }
  0x73   :  { %906 = vmatpush1.bf16.msra.mxu0 %v2512_v42  ;;  %988 = vmatpush1.bf16.msra.mxu1 %v2513_v43  ;;  %v2600_v42 = vld [vmem:[#allocation7 + $0x324] ss:$16 sps:$4 sm:$0xff]   ;;  %v2603_v43 = vld [vmem:[#allocation7 + $0x32c] ss:$16 sps:$4 sm:$0xff]  }
  0x74   :  { %907 = vmatprep.subr.bf16.mxu0 %v2514_v44  ;;  %989 = vmatprep.subr.bf16.mxu1 %v2516_v45  ;;  %v2598_v44 = vld [vmem:[#allocation7 + $0x320] ss:$16 sps:$4 sm:$0xff]   ;;  %v2601_v45 = vld [vmem:[#allocation7 + $0x328] ss:$16 sps:$4 sm:$0xff]  }
  0x77   :  { %908 = vmatpush1.bf16.msra.mxu0 %v2518_v47  ;;  %990 = vmatpush1.bf16.msra.mxu1 %v2519_v49  ;;  %v2609_v47 = vld [vmem:[#allocation7 + $0x34c] ss:$16 sps:$4 sm:$0xff]   ;;  %v2607_v49 = vld [vmem:[#allocation7 + $0x348] ss:$16 sps:$4 sm:$0xff]  }
  0x78   :  { %909 = vmatprep.subr.bf16.mxu0 %v2520_v50  ;;  %991 = vmatprep.subr.bf16.mxu1 %v2522_v51  ;;  %v2612_v50 = vld [vmem:[#allocation7 + $0x364] ss:$16 sps:$4 sm:$0xff]   ;;  %v2615_v51 = vld [vmem:[#allocation7 + $0x36c] ss:$16 sps:$4 sm:$0xff]  }
  0x7b   :  { %910 = vmatpush1.bf16.msra.mxu0 %v2524_v52  ;;  %992 = vmatpush1.bf16.msra.mxu1 %v2525_v53  ;;  %v2610_v52 = vld [vmem:[#allocation7 + $0x360] ss:$16 sps:$4 sm:$0xff]   ;;  %v2613_v53 = vld [vmem:[#allocation7 + $0x368] ss:$16 sps:$4 sm:$0xff]  }
  0x7c   :  { %911 = vmatprep.subr.bf16.mxu0 %v2526_v54  ;;  %993 = vmatprep.subr.bf16.mxu1 %v2528_v55  ;;  %v2618_v54 = vld [vmem:[#allocation7 + $0x384] ss:$16 sps:$4 sm:$0xff]   ;;  %v2621_v55 = vld [vmem:[#allocation7 + $0x38c] ss:$16 sps:$4 sm:$0xff]  }
  0x7f   :  { %912 = vmatpush1.bf16.msra.mxu0 %v2530_v56  ;;  %994 = vmatpush1.bf16.msra.mxu1 %v2531_v57  ;;  %v2616_v56 = vld [vmem:[#allocation7 + $0x380] ss:$16 sps:$4 sm:$0xff]   ;;  %v2619_v57 = vld [vmem:[#allocation7 + $0x388] ss:$16 sps:$4 sm:$0xff]  }
  0x80   :  { %913 = vmatprep.subr.bf16.mxu0 %v2532_v58  ;;  %995 = vmatprep.subr.bf16.mxu1 %v2534_v59  ;;  %v2624_v58 = vld [vmem:[#allocation7 + $0x3a4] ss:$16 sps:$4 sm:$0xff]   ;;  %v2627_v59 = vld [vmem:[#allocation7 + $0x3ac] ss:$16 sps:$4 sm:$0xff]  }
  0x83   :  { %914 = vmatpush1.bf16.msra.mxu0 %v2536_v60  ;;  %996 = vmatpush1.bf16.msra.mxu1 %v2537_v61  ;;  %v2622_v60 = vld [vmem:[#allocation7 + $0x3a0] ss:$16 sps:$4 sm:$0xff]   ;;  %v2625_v61 = vld [vmem:[#allocation7 + $0x3a8] ss:$16 sps:$4 sm:$0xff]  }
  0x84   :  { %915 = vmatprep.subr.bf16.mxu0 %v2538_v62  ;;  %997 = vmatprep.subr.bf16.mxu1 %v2540_v63  ;;  %v2630_v62 = vld [vmem:[#allocation7 + $0x3c4] ss:$16 sps:$4 sm:$0xff]   ;;  %v2633_v63 = vld [vmem:[#allocation7 + $0x3cc] ss:$16 sps:$4 sm:$0xff]  }
  0x87   :  { %916 = vmatpush1.bf16.msra.mxu0 %v2542_v0  ;;  %998 = vmatpush1.bf16.msra.mxu1 %v2543_v1  ;;  %v2628_v0 = vld [vmem:[#allocation7 + $0x3c0] ss:$16 sps:$4 sm:$0xff]   ;;  %v2631_v1 = vld [vmem:[#allocation7 + $0x3c8] ss:$16 sps:$4 sm:$0xff]  }
  0x88   :  { %926 = vmatprep.subr.bf16.mxu0 %v2546_v3  ;;  %1008 = vmatprep.subr.bf16.mxu1 %v2549_v4  ;;  %v2639_v3 = vld [vmem:[#allocation7 + $0x3ec] ss:$16 sps:$4 sm:$0xff]   ;;  %v2634_v4 = vld [vmem:[#allocation7 + $0x3e0] ss:$16 sps:$4 sm:$0xff]  }
  0x8a   :  { %918 = vmatmul.mubr.bf16.vlgmr.msra.gmra.mrb[0].mxu0 %v75_v5  ;;  %1000 = vmatmul.mubr.bf16.vlgmr.msra.gmra.mrb[0].mxu1 %v75_v5  ;;  %v2637_v5 = vld [vmem:[#allocation7 + $0x3e8] ss:$16 sps:$4 sm:$0xff]  }
  0x8b   :  { %927 = vmatpush1.bf16.msra.mxu0 %v2544_v6  ;;  %1009 = vmatpush1.bf16.msra.mxu1 %v2547_v7  ;;  %v3043_v6 = vld [vmem:[#allocation2 + $0x10] sm:$0xff] }
  0x8c   :  { %928 = vmatprep.subr.bf16.mxu0 %v2552_v8  ;;  %1010 = vmatprep.subr.bf16.mxu1 %v2555_v9  ;;  %v77_v7 = vpack.c.bf16 %v3043_v6, %v3043_v6  ;;  %v209_v8 = vlaneseq }
  0x8d   :  { %958 = vmatprep.mubr.bf16.mxu0 %v78_v35  ;;  %1040 = vmatprep.mubr.bf16.mxu1 %v78_v35 }
  0x8e   :  { %v3047_v9 = vshrl.u32 %v209_v8, 7  ;;  %v2658_v8 = vld [vmem:[#allocation8 + $0x60] ss:$16 sps:$4 sm:$0xff]  }
  0x8f   :  { %929 = vmatpush1.bf16.msra.mxu0 %v2550_v10  ;;  %1011 = vmatpush1.bf16.msra.mxu1 %v2553_v11  ;;  %v3050_v11 = vld [vmem:[#allocation5] sm:$0xff] }
  0x90   :  { %930 = vmatprep.subr.bf16.mxu0 %v2558_v12  ;;  %1012 = vmatprep.subr.bf16.mxu1 %v2561_v13  ;;  %v211_v10 = vsub.s32 0, %v3047_v9  ;;  %v3052_v12 = vld [vmem:[#allocation5 + $0x8] sm:$0xff]  ;;  %v215_v13 = vsub.s32 4, %v3047_v9 }
  0x93   :  { %931 = vmatpush1.bf16.msra.mxu0 %v2556_v14  ;;  %1013 = vmatpush1.bf16.msra.mxu1 %v2559_v15  ;;  %v212_v14 = vrot.slane %v3050_v11, %v211_v10  ;;  %v220_v15 = vrot.slane %v3052_v12, %v211_v10 }
  0x94   :  { %932 = vmatprep.subr.bf16.mxu0 %v2564_v16  ;;  %1014 = vmatprep.subr.bf16.mxu1 %v2567_v17  ;;  %v216_v16 = vrot.slane %v3050_v11, %v215_v13  ;;  %v224_v17 = vrot.slane %v3052_v12, %v215_v13  ;;  %v2666_v13 = vld [vmem:[#allocation8 + $0x84] ss:$16 sps:$4 sm:$0xff]  }
  0x97   :  { %933 = vmatpush1.bf16.msra.mxu0 %v2562_v18  ;;  %1015 = vmatpush1.bf16.msra.mxu1 %v2565_v19  ;;  %v232_v18 = vrot.slane %v212_v14, %v211_v10  ;;  %v240_v19 = vrot.slane %v220_v15, %v211_v10  ;;  %v2669_v14 = vld [vmem:[#allocation8 + $0x284] ss:$16 sps:$4 sm:$0xff]   ;;  %v2664_v15 = vld [vmem:[#allocation8 + $0x80] ss:$16 sps:$4 sm:$0xff]  }
  0x98   :  { %934 = vmatprep.subr.bf16.mxu0 %v2570_v20  ;;  %1016 = vmatprep.subr.bf16.mxu1 %v2573_v21  ;;  %v236_v20 = vrot.slane %v216_v16, %v211_v10  ;;  %v244_v21 = vrot.slane %v224_v17, %v211_v10  ;;  %v2661_v10 = vld [vmem:[#allocation8 + $0x260] ss:$16 sps:$4 sm:$0xff]   ;;  %v2672_v17 = vld [vmem:[#allocation8 + $0xa4] ss:$16 sps:$4 sm:$0xff]  }
  0x99   :  { %v2667_v16 = vld [vmem:[#allocation8 + $0x280] ss:$16 sps:$4 sm:$0xff]  }
  0x9b   :  { %935 = vmatpush1.bf16.msra.mxu0 %v2568_v22  ;;  %1017 = vmatpush1.bf16.msra.mxu1 %v2571_v23 }
  0x9c   :  { %936 = vmatprep.subr.bf16.mxu0 %v2576_v24  ;;  %1018 = vmatprep.subr.bf16.mxu1 %v2579_v25 }
  0x9f   :  { %937 = vmatpush1.bf16.msra.mxu0 %v2574_v26  ;;  %1019 = vmatpush1.bf16.msra.mxu1 %v2577_v27 }
  0xa0   :  { %938 = vmatprep.subr.bf16.mxu0 %v2582_v28  ;;  %1020 = vmatprep.subr.bf16.mxu1 %v2585_v29 }
  0xa3   :  { %939 = vmatpush1.bf16.msra.mxu0 %v2580_v30  ;;  %1021 = vmatpush1.bf16.msra.mxu1 %v2583_v31 }
  0xa4   :  { %940 = vmatprep.subr.bf16.mxu0 %v2588_v33  ;;  %1022 = vmatprep.subr.bf16.mxu1 %v2591_v34 }
  0xa7   :  { %941 = vmatpush1.bf16.msra.mxu0 %v2586_v36  ;;  %1023 = vmatpush1.bf16.msra.mxu1 %v2589_v37 }
  0xa8   :  { %942 = vmatprep.subr.bf16.mxu0 %v2594_v38  ;;  %1024 = vmatprep.subr.bf16.mxu1 %v2597_v39 }
  0xab   :  { %943 = vmatpush1.bf16.msra.mxu0 %v2592_v40  ;;  %1025 = vmatpush1.bf16.msra.mxu1 %v2595_v41 }
  0xac   :  { %944 = vmatprep.subr.bf16.mxu0 %v2600_v42  ;;  %1026 = vmatprep.subr.bf16.mxu1 %v2603_v43 }
  0xaf   :  { %945 = vmatpush1.bf16.msra.mxu0 %v2598_v44  ;;  %1027 = vmatpush1.bf16.msra.mxu1 %v2601_v45 }
  0xb0   :  { %946 = vmatprep.subr.bf16.mxu0 %v2606_v46  ;;  %1028 = vmatprep.subr.bf16.mxu1 %v2609_v47 }
  0xb3   :  { %947 = vmatpush1.bf16.msra.mxu0 %v2604_v48  ;;  %1029 = vmatpush1.bf16.msra.mxu1 %v2607_v49 }
  0xb4   :  { %948 = vmatprep.subr.bf16.mxu0 %v2612_v50  ;;  %1030 = vmatprep.subr.bf16.mxu1 %v2615_v51 }
  0xb7   :  { %949 = vmatpush1.bf16.msra.mxu0 %v2610_v52  ;;  %1031 = vmatpush1.bf16.msra.mxu1 %v2613_v53 }
  0xb8   :  { %950 = vmatprep.subr.bf16.mxu0 %v2618_v54  ;;  %1032 = vmatprep.subr.bf16.mxu1 %v2621_v55 }
  0xbb   :  { %951 = vmatpush1.bf16.msra.mxu0 %v2616_v56  ;;  %1033 = vmatpush1.bf16.msra.mxu1 %v2619_v57  ;;  %v2640_v57 = vld [vmem:[#allocation8] ss:$16 sps:$4 sm:$0xff]  }
  0xbc   :  { %952 = vmatprep.subr.bf16.mxu0 %v2624_v58  ;;  %1034 = vmatprep.subr.bf16.mxu1 %v2627_v59  ;;  %v2642_v58 = vld [vmem:[#allocation8 + $0x4] ss:$16 sps:$4 sm:$0xff]   ;;  %v2643_v59 = vld [vmem:[#allocation8 + $0x200] ss:$16 sps:$4 sm:$0xff]  }
  0xbf   :  { %953 = vmatpush1.bf16.msra.mxu0 %v2622_v60  ;;  %1035 = vmatpush1.bf16.msra.mxu1 %v2625_v61  ;;  %v2645_v60 = vld [vmem:[#allocation8 + $0x204] ss:$16 sps:$4 sm:$0xff]  }
  0xc0   :  { %954 = vmatprep.subr.bf16.mxu0 %v2630_v62  ;;  %1036 = vmatprep.subr.bf16.mxu1 %v2633_v63  ;;  %v2648_v61 = vld [vmem:[#allocation8 + $0x24] ss:$16 sps:$4 sm:$0xff]   ;;  %v2646_v63 = vld [vmem:[#allocation8 + $0x20] ss:$16 sps:$4 sm:$0xff]  }
  0xc1   :  { %v2651_v62 = vld [vmem:[#allocation8 + $0x224] ss:$16 sps:$4 sm:$0xff]  }
  0xc3   :  { %955 = vmatpush1.bf16.msra.mxu0 %v2628_v0  ;;  %1037 = vmatpush1.bf16.msra.mxu1 %v2631_v1  ;;  %v2649_v0 = vld [vmem:[#allocation8 + $0x220] ss:$16 sps:$4 sm:$0xff]   ;;  %v2654_v1 = vld [vmem:[#allocation8 + $0x44] ss:$16 sps:$4 sm:$0xff]  }
  0xc4   :  { %956 = vmatprep.subr.bf16.mxu0 %v2636_v2  ;;  %1038 = vmatprep.subr.bf16.mxu1 %v2639_v3  ;;  %v2657_v2 = vld [vmem:[#allocation8 + $0x244] ss:$16 sps:$4 sm:$0xff]   ;;  %v2652_v3 = vld [vmem:[#allocation8 + $0x40] ss:$16 sps:$4 sm:$0xff]  }
  0xc7   :  { %957 = vmatpush1.bf16.msra.mxu0 %v2634_v4  ;;  %1039 = vmatpush1.bf16.msra.mxu1 %v2637_v5  ;;  %v2655_v4 = vld [vmem:[#allocation8 + $0x240] ss:$16 sps:$4 sm:$0xff]   ;;  %v2660_v5 = vld [vmem:[#allocation8 + $0x64] ss:$16 sps:$4 sm:$0xff]  }
  0xc8   :  { %1984 = vmatprep.subr.bf16.mxu0 %v2642_v58  ;;  %2025 = vmatprep.subr.bf16.mxu1 %v2645_v60  ;;  %v2714_v58 = vld [vmem:[#allocation8 + $0x184] ss:$16 sps:$4 sm:$0xff]   ;;  %v2715_v60 = vld [vmem:[#allocation8 + $0x380] ss:$16 sps:$4 sm:$0xff]  }
  0xca   :  { %959 = vmatmul.mubr.bf16.vlgmr.msra.gmra.mrb[0].mxu0 %v77_v7  ;;  %1041 = vmatmul.mubr.bf16.vlgmr.msra.gmra.mrb[0].mxu1 %v77_v7  ;;  %v2663_v7 = vld [vmem:[#allocation8 + $0x264] ss:$16 sps:$4 sm:$0xff]  }
  0xcb   :  { %1985 = vmatpush1.bf16.msra.mxu0 %v2640_v57  ;;  %2026 = vmatpush1.bf16.msra.mxu1 %v2643_v59  ;;  %v2709_v57 = vld [vmem:[#allocation8 + $0x360] ss:$16 sps:$4 sm:$0xff]  }
  0xcc   :  { %1986 = vmatprep.subr.bf16.mxu0 %v2648_v61  ;;  %2027 = vmatprep.subr.bf16.mxu1 %v2651_v62  ;;  %v2712_v59 = vld [vmem:[#allocation8 + $0x180] ss:$16 sps:$4 sm:$0xff]   ;;  %v2717_v61 = vld [vmem:[#allocation8 + $0x384] ss:$16 sps:$4 sm:$0xff]  }
  0xcd   :  { %v2720_v62 = vld [vmem:[#allocation8 + $0x1a4] ss:$16 sps:$4 sm:$0xff]  }
  0xcf   :  { %1987 = vmatpush1.bf16.msra.mxu0 %v2646_v63  ;;  %2028 = vmatpush1.bf16.msra.mxu1 %v2649_v0  ;;  %v2723_v63 = vld [vmem:[#allocation8 + $0x3a4] ss:$16 sps:$4 sm:$0xff]   ;;  %v2718_v0 = vld [vmem:[#allocation8 + $0x1a0] ss:$16 sps:$4 sm:$0xff]  }
  0xd0   :  { %1988 = vmatprep.subr.bf16.mxu0 %v2654_v1  ;;  %2029 = vmatprep.subr.bf16.mxu1 %v2657_v2  ;;  %v2721_v1 = vld [vmem:[#allocation8 + $0x3a0] ss:$16 sps:$4 sm:$0xff]   ;;  %v2726_v2 = vld [vmem:[#allocation8 + $0x1c4] ss:$16 sps:$4 sm:$0xff]  }
  0xd3   :  { %1989 = vmatpush1.bf16.msra.mxu0 %v2652_v3  ;;  %2030 = vmatpush1.bf16.msra.mxu1 %v2655_v4  ;;  %v2729_v3 = vld [vmem:[#allocation8 + $0x3c4] ss:$16 sps:$4 sm:$0xff]   ;;  %v2724_v4 = vld [vmem:[#allocation8 + $0x1c0] ss:$16 sps:$4 sm:$0xff]  }
  0xd4   :  { %1990 = vmatprep.subr.bf16.mxu0 %v2660_v5  ;;  %2031 = vmatprep.subr.bf16.mxu1 %v2663_v7  ;;  %v2727_v5 = vld [vmem:[#allocation8 + $0x3c0] ss:$16 sps:$4 sm:$0xff]   ;;  %v2732_v7 = vld [vmem:[#allocation8 + $0x1e4] ss:$16 sps:$4 sm:$0xff]  }
  0xd7   :  { %1991 = vmatpush1.bf16.msra.mxu0 %v2658_v8  ;;  %2032 = vmatpush1.bf16.msra.mxu1 %v2661_v10  ;;  %v2735_v8 = vld [vmem:[#allocation8 + $0x3e4] ss:$16 sps:$4 sm:$0xff]   ;;  %v2730_v10 = vld [vmem:[#allocation8 + $0x1e0] ss:$16 sps:$4 sm:$0xff]  }
  0xd8   :  { %1992 = vmatprep.subr.bf16.mxu0 %v2666_v13  ;;  %2033 = vmatprep.subr.bf16.mxu1 %v2669_v14  ;;  %v2733_v13 = vld [vmem:[#allocation8 + $0x3e0] ss:$16 sps:$4 sm:$0xff]   ;;  %v2738_v14 = vld [vmem:[#allocation8 + $0xc] ss:$16 sps:$4 sm:$0xff]  }
  0xdb   :  { %1993 = vmatpush1.bf16.msra.mxu0 %v2664_v15  ;;  %2034 = vmatpush1.bf16.msra.mxu1 %v2667_v16  ;;  %v2741_v15 = vld [vmem:[#allocation8 + $0x20c] ss:$16 sps:$4 sm:$0xff]  }
  0xdc   :  { %1994 = vmatprep.subr.bf16.mxu0 %v2672_v17 }
 0x19d   :  { %v960_v22 = vpop.f32.mrb[0].mxu0  ;;  %v1042_v23 = vpop.f32.mrb[0].mxu1 }
 0x19e   :  { %v2429_v24 = vadd.f32 %v960_v22, %v232_v18  ;;  %v2431_v25 = vadd.f32 %v1042_v23, %v240_v19  ;;  %v962_v26 = vpop.f32.mrb[1].mxu0  ;;  %v1044_v27 = vpop.f32.mrb[1].mxu1  ;;  %v2675_v18 = vld [vmem:[#allocation8 + $0x2a4] ss:$16 sps:$4 sm:$0xff]   ;;  %v2670_v19 = vld [vmem:[#allocation8 + $0xa0] ss:$16 sps:$4 sm:$0xff]  }
 0x19f   :  { %v2430_v28 = vadd.f32 %v962_v26, %v236_v20  ;;  %v2432_v29 = vadd.f32 %v1044_v27, %v244_v21  ;;  %v964_v30 = vpop.f32.mrb[2].mxu0  ;;  %v1046_v31 = vpop.f32.mrb[2].mxu1  ;;  %v2673_v20 = vld [vmem:[#allocation8 + $0x2a0] ss:$16 sps:$4 sm:$0xff]   ;;  %v2678_v21 = vld [vmem:[#allocation8 + $0xc4] ss:$16 sps:$4 sm:$0xff]   ;;  %2035 = vmatprep.subr.bf16.mxu1 %v2675_v18  ;;  %1995 = vmatpush1.bf16.msra.mxu0 %v2670_v19 }
 0x1a0   :  { %v1053_v32 = vmul.f32 0.70710677, %v2429_v24  ;;  %v1055_v33 = vmul.f32 0.70710677, %v2431_v25  ;;  %v965_v36 = vpop.f32.mrb[3].mxu0  ;;  %v1047_v37 = vpop.f32.mrb[3].mxu1  ;;  %2036 = vmatpush1.bf16.msra.mxu1 %v2673_v20  ;;  %1996 = vmatprep.subr.bf16.mxu0 %v2678_v21 }
 0x1a1   :  { %v1054_v34 = vmul.f32 0.70710677, %v2430_v28  ;;  %v1056_v35 = vmul.f32 0.70710677, %v2432_v29  ;;  %v1049_v40 = vmul.f32 0.5, %v2429_v24  ;;  %v1050_v46 = vmul.f32 0.5, %v2430_v28 }
 0x1a2   :  { %2832 = verf.f32 %v1053_v32  ;;  %v1051_v48 = vmul.f32 0.5, %v2431_v25  ;;  %v1052_v51 = vmul.f32 0.5, %v2432_v29  ;;  %v2681_v22 = vld [vmem:[#allocation8 + $0x2c4] ss:$16 sps:$4 sm:$0xff]   ;;  %v2676_v23 = vld [vmem:[#allocation8 + $0xc0] ss:$16 sps:$4 sm:$0xff]  }
 0x1a3   :  { %2834 = verf.f32 %v1055_v33  ;;  %v2679_v24 = vld [vmem:[#allocation8 + $0x2c0] ss:$16 sps:$4 sm:$0xff]   ;;  %v2684_v25 = vld [vmem:[#allocation8 + $0xe4] ss:$16 sps:$4 sm:$0xff]   ;;  %2037 = vmatprep.subr.bf16.mxu1 %v2681_v22  ;;  %1997 = vmatpush1.bf16.msra.mxu0 %v2676_v23  ;;  %v1098_v19 = vsub.s32 1, %v3047_v9  ;;  %v1102_v20 = vsub.s32 5, %v3047_v9 }
 0x1a4   :  { %2836 = verf.f32 %v1054_v34  ;;  %v2687_v26 = vld [vmem:[#allocation8 + $0x2e4] ss:$16 sps:$4 sm:$0xff]   ;;  %v2682_v27 = vld [vmem:[#allocation8 + $0xe0] ss:$16 sps:$4 sm:$0xff]   ;;  %2038 = vmatpush1.bf16.msra.mxu1 %v2679_v24  ;;  %1998 = vmatprep.subr.bf16.mxu0 %v2684_v25  ;;  %v1138_v21 = vsub.s32 2, %v3047_v9  ;;  %v1142_v22 = vsub.s32 6, %v3047_v9 }
 0x1a5   :  { %2838 = verf.f32 %v1056_v35  ;;  %v2685_v28 = vld [vmem:[#allocation8 + $0x2e0] ss:$16 sps:$4 sm:$0xff]   ;;  %v2690_v29 = vld [vmem:[#allocation8 + $0x104] ss:$16 sps:$4 sm:$0xff]   ;;  %2039 = vmatprep.subr.bf16.mxu1 %v2687_v26  ;;  %v1103_v23 = vrot.slane %v3050_v11, %v1102_v20  ;;  %v1111_v24 = vrot.slane %v3052_v12, %v1102_v20  ;;  %v1099_v25 = vrot.slane %v3050_v11, %v1098_v19  ;;  %v2772_v20 = vld [vmem:[#allocation8 + $0xc8] ss:$16 sps:$4 sm:$0xff]  }
 0x1a6   :  { %v2693_v30 = vld [vmem:[#allocation8 + $0x304] ss:$16 sps:$4 sm:$0xff]   ;;  %v2688_v31 = vld [vmem:[#allocation8 + $0x100] ss:$16 sps:$4 sm:$0xff]   ;;  %v1107_v26 = vrot.slane %v3052_v12, %v1098_v19 }
 0x1a7   :  { %1999 = vmatpush1.bf16.msra.mxu0 %v2682_v27  ;;  %v2691_v32 = vld [vmem:[#allocation8 + $0x300] ss:$16 sps:$4 sm:$0xff]   ;;  %v2696_v33 = vld [vmem:[#allocation8 + $0x124] ss:$16 sps:$4 sm:$0xff]   ;;  %v1143_v27 = vrot.slane %v3050_v11, %v1142_v22 }
 0x1a8   :  { %2040 = vmatpush1.bf16.msra.mxu1 %v2685_v28  ;;  %2000 = vmatprep.subr.bf16.mxu0 %v2690_v29  ;;  %v2699_v34 = vld [vmem:[#allocation8 + $0x324] ss:$16 sps:$4 sm:$0xff]   ;;  %v2694_v35 = vld [vmem:[#allocation8 + $0x120] ss:$16 sps:$4 sm:$0xff]   ;;  %v1151_v28 = vrot.slane %v3052_v12, %v1142_v22  ;;  %v1139_v29 = vrot.slane %v3050_v11, %v1138_v21  ;;  %v2780_v22 = vld [vmem:[#allocation8 + $0xec] ss:$16 sps:$4 sm:$0xff]  }
 0x1a9   :  { %2041 = vmatprep.subr.bf16.mxu1 %v2693_v30  ;;  %v2697_v36 = vld [vmem:[#allocation8 + $0x320] ss:$16 sps:$4 sm:$0xff]   ;;  %v2702_v37 = vld [vmem:[#allocation8 + $0x144] ss:$16 sps:$4 sm:$0xff]   ;;  %v1147_v30 = vrot.slane %v3052_v12, %v1138_v21 }
 0x1ab   :  { %2001 = vmatpush1.bf16.msra.mxu0 %v2688_v31  ;;  %v1123_v31 = vrot.slane %v1103_v23, %v1098_v19  ;;  %v2783_v23 = vld [vmem:[#allocation8 + $0x2ec] ss:$16 sps:$4 sm:$0xff]  }
 0x1ac   :  { %v2833_v38 = vpop.eup %2832  ;;  %2042 = vmatpush1.bf16.msra.mxu1 %v2691_v32  ;;  %2002 = vmatprep.subr.bf16.mxu0 %v2696_v33  ;;  %v1131_v32 = vrot.slane %v1111_v24, %v1098_v19  ;;  %v1119_v33 = vrot.slane %v1099_v25, %v1098_v19  ;;  %v2778_v24 = vld [vmem:[#allocation8 + $0xe8] ss:$16 sps:$4 sm:$0xff]  }
 0x1ad   :  { %v2835_v39 = vpop.eup %2834  ;;  %v1061_v41 = vadd.f32 1.0, %v2833_v38  ;;  %2043 = vmatprep.subr.bf16.mxu1 %v2699_v34  ;;  %v2705_v38 = vld [vmem:[#allocation8 + $0x344] ss:$16 sps:$4 sm:$0xff]   ;;  %v1127_v34 = vrot.slane %v1107_v26, %v1098_v19  ;;  %v2777_v19 = vld [vmem:[#allocation8 + $0x2cc] ss:$16 sps:$4 sm:$0xff]  }
 0x1ae   :  { %v2837_v42 = vpop.eup %2836  ;;  %v1063_v45 = vadd.f32 1.0, %v2835_v39  ;;  %v2700_v39 = vld [vmem:[#allocation8 + $0x140] ss:$16 sps:$4 sm:$0xff]   ;;  %v2781_v25 = vld [vmem:[#allocation8 + $0x2e8] ss:$16 sps:$4 sm:$0xff]  }
 0x1af   :  { %v2839_v43 = vpop.eup %2838  ;;  %v3059_v44 = vmul.f32 %v1061_v41, %v1049_v40  ;;  %v1062_v47 = vadd.f32 1.0, %v2837_v42  ;;  %2003 = vmatpush1.bf16.msra.mxu0 %v2694_v35  ;;  %v2703_v40 = vld [vmem:[#allocation8 + $0x340] ss:$16 sps:$4 sm:$0xff]   ;;  %v2786_v26 = vld [vmem:[#allocation8 + $0x10c] ss:$16 sps:$4 sm:$0xff]  }
 0x1b0   :  { %v1064_v50 = vadd.f32 1.0, %v2839_v43  ;;  %v3063_v52 = vmul.f32 %v1063_v45, %v1051_v48  ;;  %2044 = vmatpush1.bf16.msra.mxu1 %v2697_v36  ;;  %2004 = vmatprep.subr.bf16.mxu0 %v2702_v37  ;;  %v1163_v36 = vrot.slane %v1143_v27, %v1138_v21  ;;  %v1171_v37 = vrot.slane %v1151_v28, %v1138_v21  ;;  %v2789_v27 = vld [vmem:[#allocation8 + $0x30c] ss:$16 sps:$4 sm:$0xff]   ;;  %v2784_v28 = vld [vmem:[#allocation8 + $0x108] ss:$16 sps:$4 sm:$0xff]  }
 0x1b1   :  { %v3061_v49 = vmul.f32 %v1062_v47, %v1050_v46  ;;  %2045 = vmatprep.subr.bf16.mxu1 %v2705_v38  ;;  %v1159_v38 = vrot.slane %v1139_v29, %v1138_v21  ;;  %v2787_v29 = vld [vmem:[#allocation8 + $0x308] ss:$16 sps:$4 sm:$0xff]  }
 0x1b2   :  { %v3067_v54 = vmul.f32 %v1064_v50, %v1052_v51 }
 0x1b3   :  { %v1069_v53 = vadd.f32 %v3061_v49, %v3059_v44  ;;  %2005 = vmatpush1.bf16.msra.mxu0 %v2700_v39  ;;  %v1167_v39 = vrot.slane %v1147_v30, %v1138_v21  ;;  %v2775_v21 = vld [vmem:[#allocation8 + $0x2c8] ss:$16 sps:$4 sm:$0xff]   ;;  %v2792_v30 = vld [vmem:[#allocation8 + $0x12c] ss:$16 sps:$4 sm:$0xff]  }
 0x1b4   :  { %2046 = vmatpush1.bf16.msra.mxu1 %v2703_v40 }
 0x1b5   :  { %v1070_v55 = vadd.f32 %v1069_v53, %v3063_v52 }
 0x1b7   :  { %v1071_v56 = vadd.f32 %v1070_v55, %v3067_v54 }
 0x1b9   :  { %1072 = vadd.xlane.f32.xlu0 %v1071_v56  ;;  %v2711_v56 = vld [vmem:[#allocation8 + $0x364] ss:$16 sps:$4 sm:$0xff]  }
 0x1ba   :  { %2047 = vmatprep.subr.bf16.mxu1 %v2711_v56 }
 0x1bb   :  { %2048 = vmatpush1.bf16.msra.mxu1 %v2709_v57 }
 0x1bc   :  { %2049 = vmatprep.subr.bf16.mxu1 %v2717_v61  ;;  %v2745_v61 = vld [vmem:[#allocation8 + $0x228] ss:$16 sps:$4 sm:$0xff]  }
 0x1bf   :  { %2050 = vmatpush1.bf16.msra.mxu1 %v2715_v60 }
 0x1c0   :  { %2051 = vmatprep.subr.bf16.mxu1 %v2723_v63  ;;  %v2753_v63 = vld [vmem:[#allocation8 + $0x24c] ss:$16 sps:$4 sm:$0xff]  }
 0x1c3   :  { %2052 = vmatpush1.bf16.msra.mxu1 %v2721_v1  ;;  %v2751_v1 = vld [vmem:[#allocation8 + $0x248] ss:$16 sps:$4 sm:$0xff]  }
 0x1c4   :  { %2053 = vmatprep.subr.bf16.mxu1 %v2729_v3  ;;  %v2759_v3 = vld [vmem:[#allocation8 + $0x26c] ss:$16 sps:$4 sm:$0xff]  }
 0x1c7   :  { %2054 = vmatpush1.bf16.msra.mxu1 %v2727_v5  ;;  %v2757_v5 = vld [vmem:[#allocation8 + $0x268] ss:$16 sps:$4 sm:$0xff]  }
 0x1c8   :  { %2055 = vmatprep.subr.bf16.mxu1 %v2735_v8  ;;  %v2765_v8 = vld [vmem:[#allocation8 + $0x28c] ss:$16 sps:$4 sm:$0xff]  }
 0x1cb   :  { %2056 = vmatpush1.bf16.msra.mxu1 %v2733_v13  ;;  %v2763_v13 = vld [vmem:[#allocation8 + $0x288] ss:$16 sps:$4 sm:$0xff]  }
 0x1cc   :  { %2107 = vmatprep.subr.bf16.mxu1 %v2741_v15  ;;  %v2771_v15 = vld [vmem:[#allocation8 + $0x2ac] ss:$16 sps:$4 sm:$0xff]  }
 0x246   :  { %v1073_v41 = vpop.xlane.xlu0 %1072 }
 0x247   :  { %v1075_v42 = vmul.f32 0.001953125, %v1073_v41 }
 0x249   :  { %v3072_v43 = vsub.f32 %v3059_v44, %v1075_v42  ;;  %v3075_v45 = vsub.f32 %v3061_v49, %v1075_v42  ;;  %v3078_v46 = vsub.f32 %v3063_v52, %v1075_v42  ;;  %v3081_v47 = vsub.f32 %v3067_v54, %v1075_v42  ;;  %v2708_v52 = vld [vmem:[#allocation8 + $0x164] ss:$16 sps:$4 sm:$0xff]   ;;  %v2706_v54 = vld [vmem:[#allocation8 + $0x160] ss:$16 sps:$4 sm:$0xff]  }
 0x24a   :  { %2006 = vmatprep.subr.bf16.mxu0 %v2708_v52 }
 0x24b   :  { %v1080_v48 = vmul.f32 %v3072_v43, %v3072_v43  ;;  %v1081_v50 = vmul.f32 %v3075_v45, %v3075_v45  ;;  %v1082_v51 = vmul.f32 %v3078_v46, %v3078_v46  ;;  %v1083_v49 = vmul.f32 %v3081_v47, %v3081_v47  ;;  %2007 = vmatpush1.bf16.msra.mxu0 %v2706_v54 }
 0x24c   :  { %2008 = vmatprep.subr.bf16.mxu0 %v2714_v58  ;;  %v2736_v58 = vld [vmem:[#allocation8 + $0x8] ss:$16 sps:$4 sm:$0xff]  }
 0x24d   :  { %v1084_v44 = vadd.f32 %v1081_v50, %v1080_v48 }
 0x24f   :  { %v1085_v53 = vadd.f32 %v1084_v44, %v1082_v51  ;;  %2009 = vmatpush1.bf16.msra.mxu0 %v2712_v59  ;;  %v2739_v59 = vld [vmem:[#allocation8 + $0x208] ss:$16 sps:$4 sm:$0xff]  }
 0x250   :  { %2010 = vmatprep.subr.bf16.mxu0 %v2720_v62  ;;  %v2750_v62 = vld [vmem:[#allocation8 + $0x4c] ss:$16 sps:$4 sm:$0xff]  }
 0x251   :  { %v1086_v55 = vadd.f32 %v1085_v53, %v1083_v49 }
 0x253   :  { %1087 = vadd.xlane.f32.xlu0 %v1086_v55  ;;  %2011 = vmatpush1.bf16.msra.mxu0 %v2718_v0  ;;  %v2748_v0 = vld [vmem:[#allocation8 + $0x48] ss:$16 sps:$4 sm:$0xff]  }
 0x254   :  { %2012 = vmatprep.subr.bf16.mxu0 %v2726_v2  ;;  %v2756_v2 = vld [vmem:[#allocation8 + $0x6c] ss:$16 sps:$4 sm:$0xff]  }
 0x257   :  { %2013 = vmatpush1.bf16.msra.mxu0 %v2724_v4  ;;  %v2754_v4 = vld [vmem:[#allocation8 + $0x68] ss:$16 sps:$4 sm:$0xff]  }
 0x258   :  { %2014 = vmatprep.subr.bf16.mxu0 %v2732_v7  ;;  %v2762_v7 = vld [vmem:[#allocation8 + $0x8c] ss:$16 sps:$4 sm:$0xff]  }
 0x25b   :  { %2015 = vmatpush1.bf16.msra.mxu0 %v2730_v10  ;;  %v2760_v10 = vld [vmem:[#allocation8 + $0x88] ss:$16 sps:$4 sm:$0xff]  }
 0x25c   :  { %2066 = vmatprep.subr.bf16.mxu0 %v2738_v14  ;;  %v2768_v14 = vld [vmem:[#allocation8 + $0xac] ss:$16 sps:$4 sm:$0xff]  }
 0x2e0   :  { %v1088_v16 = vpop.xlane.xlu0 %1087 }
 0x2e1   :  { %v1089_v17 = vmul.f32 0.001953125, %v1088_v16  ;;  %v2766_v16 = vld [vmem:[#allocation8 + $0xa8] ss:$16 sps:$4 sm:$0xff]  }
 0x2e3   :  { %v1090_v18 = vadd.f32 1e-05, %v1089_v17  ;;  %v2769_v17 = vld [vmem:[#allocation8 + $0x2a8] ss:$16 sps:$4 sm:$0xff]  }
 0x2e5   :  { %2840 = vrsqrt.f32 %v1090_v18  ;;  %v2774_v18 = vld [vmem:[#allocation8 + $0xcc] ss:$16 sps:$4 sm:$0xff]  }
 0x2ef   :  { %v2841_v35 = vpop.eup %2840 }
 0x2f0   :  { %v1093_v40 = vmul.f32 %v2841_v35, %v3075_v45  ;;  %v1095_v41 = vmul.f32 %v2841_v35, %v3081_v47  ;;  %v1092_v42 = vmul.f32 %v2841_v35, %v3072_v43  ;;  %v1094_v48 = vmul.f32 %v2841_v35, %v3078_v46  ;;  %v2744_v43 = vld [vmem:[#allocation8 + $0x2c] ss:$16 sps:$4 sm:$0xff]   ;;  %v2742_v47 = vld [vmem:[#allocation8 + $0x28] ss:$16 sps:$4 sm:$0xff]  }
 0x2f1   :  { %v2747_v46 = vld [vmem:[#allocation8 + $0x22c] ss:$16 sps:$4 sm:$0xff]  }
 0x2f2   :  { %v1133_v50 = vmul.f32 %v1123_v31, %v1093_v40  ;;  %v1135_v51 = vmul.f32 %v1131_v32, %v1095_v41  ;;  %v1132_v44 = vmul.f32 %v1119_v33, %v1092_v42  ;;  %v1134_v49 = vmul.f32 %v1127_v34, %v1094_v48  ;;  %v2795_v31 = vld [vmem:[#allocation8 + $0x32c] ss:$16 sps:$4 sm:$0xff]   ;;  %v2790_v32 = vld [vmem:[#allocation8 + $0x128] ss:$16 sps:$4 sm:$0xff]  }
 0x2f3   :  { %v2793_v33 = vld [vmem:[#allocation8 + $0x328] ss:$16 sps:$4 sm:$0xff]   ;;  %v2798_v34 = vld [vmem:[#allocation8 + $0x14c] ss:$16 sps:$4 sm:$0xff]  }
 0x2f4   :  { %v1173_v53 = vadd.f32 %v1163_v36, %v1133_v50  ;;  %v1175_v55 = vadd.f32 %v1171_v37, %v1135_v51  ;;  %v1172_v52 = vadd.f32 %v1159_v38, %v1132_v44  ;;  %v1174_v56 = vadd.f32 %v1167_v39, %v1134_v49  ;;  %v2801_v35 = vld [vmem:[#allocation8 + $0x34c] ss:$16 sps:$4 sm:$0xff]   ;;  %v2796_v36 = vld [vmem:[#allocation8 + $0x148] ss:$16 sps:$4 sm:$0xff]  }
 0x2f5   :  { %v2799_v37 = vld [vmem:[#allocation8 + $0x348] ss:$16 sps:$4 sm:$0xff]   ;;  %v2804_v38 = vld [vmem:[#allocation8 + $0x16c] ss:$16 sps:$4 sm:$0xff]  }
 0x2f6   :  { %v1177_v54 = vpack.c.bf16 %v1173_v53, %v1173_v53  ;;  %v1179_v57 = vpack.c.bf16 %v1175_v55, %v1175_v55  ;;  %v3107_v60 = vpack.c.bf16 %v1172_v52, %v1172_v52  ;;  %v3109_v45 = vpack.c.bf16 %v1174_v56, %v1174_v56  ;;  %v2807_v39 = vld [vmem:[#allocation8 + $0x36c] ss:$16 sps:$4 sm:$0xff]   ;;  %v2802_v40 = vld [vmem:[#allocation8 + $0x168] ss:$16 sps:$4 sm:$0xff]  }
 0x2f7   :  { %v2805_v41 = vld [vmem:[#allocation8 + $0x368] ss:$16 sps:$4 sm:$0xff]   ;;  %v2810_v42 = vld [vmem:[#allocation8 + $0x18c] ss:$16 sps:$4 sm:$0xff]  }
 0x2f8   :  { %2016 = vmatprep.mubr.bf16.mxu0 %v1177_v54  ;;  %2057 = vmatprep.mubr.bf16.mxu1 %v1179_v57  ;;  %v2813_v48 = vld [vmem:[#allocation8 + $0x38c] ss:$16 sps:$4 sm:$0xff]   ;;  %v2808_v50 = vld [vmem:[#allocation8 + $0x188] ss:$16 sps:$4 sm:$0xff]  }
 0x2f9   :  { %2017 = vmatmul.mubr.bf16.vlgmr.msra.gmra.mrb[4].mxu0 %v3107_v60  ;;  %2058 = vmatmul.mubr.bf16.vlgmr.msra.gmra.mrb[4].mxu1 %v3109_v45  ;;  %v2811_v51 = vld [vmem:[#allocation8 + $0x388] ss:$16 sps:$4 sm:$0xff]   ;;  %v2816_v44 = vld [vmem:[#allocation8 + $0x1ac] ss:$16 sps:$4 sm:$0xff]  }
 0x2fa   :  { %2067 = vmatpush1.bf16.msra.mxu0 %v2736_v58  ;;  %2108 = vmatpush1.bf16.msra.mxu1 %v2739_v59  ;;  %v2819_v49 = vld [vmem:[#allocation8 + $0x3ac] ss:$16 sps:$4 sm:$0xff]   ;;  %v2814_v53 = vld [vmem:[#allocation8 + $0x1a8] ss:$16 sps:$4 sm:$0xff]  }
 0x2fb   :  { %2098 = vmatprep.mubr.bf16.mxu0 %v1177_v54  ;;  %2139 = vmatprep.mubr.bf16.mxu1 %v1179_v57  ;;  %v2817_v55 = vld [vmem:[#allocation8 + $0x3a8] ss:$16 sps:$4 sm:$0xff]   ;;  %v2822_v52 = vld [vmem:[#allocation8 + $0x1cc] ss:$16 sps:$4 sm:$0xff]  }
 0x2fc   :  { %2068 = vmatprep.subr.bf16.mxu0 %v2744_v43  ;;  %2109 = vmatprep.subr.bf16.mxu1 %v2747_v46  ;;  %v2825_v56 = vld [vmem:[#allocation8 + $0x3cc] ss:$16 sps:$4 sm:$0xff]   ;;  %v2820_v54 = vld [vmem:[#allocation8 + $0x1c8] ss:$16 sps:$4 sm:$0xff]  }
 0x2fd   :  { %v2823_v57 = vld [vmem:[#allocation8 + $0x3c8] ss:$16 sps:$4 sm:$0xff]   ;;  %v2828_v58 = vld [vmem:[#allocation8 + $0x1ec] ss:$16 sps:$4 sm:$0xff]  }
 0x2fe   :  { %2069 = vmatpush1.bf16.msra.mxu0 %v2742_v47  ;;  %2110 = vmatpush1.bf16.msra.mxu1 %v2745_v61  ;;  %v2831_v59 = vld [vmem:[#allocation8 + $0x3ec] ss:$16 sps:$4 sm:$0xff]   ;;  %v2826_v43 = vld [vmem:[#allocation8 + $0x1e8] ss:$16 sps:$4 sm:$0xff]   ;;  %v1310_v47 = vsub.s32 3, %v3047_v9  ;;  %v1314_v61 = vsub.s32 7, %v3047_v9 }
 0x2ff   :  { %2070 = vmatprep.subr.bf16.mxu0 %v2750_v62  ;;  %2111 = vmatprep.subr.bf16.mxu1 %v2753_v63  ;;  %v2829_v46 = vld [vmem:[#allocation8 + $0x3e8] ss:$16 sps:$4 sm:$0xff]  }
 0x300   :  { %v1311_v62 = vrot.slane %v3050_v11, %v1310_v47  ;;  %v1315_v63 = vrot.slane %v3050_v11, %v1314_v61  ;;  %v1319_v11 = vrot.slane %v3052_v12, %v1310_v47 }
 0x302   :  { %2071 = vmatpush1.bf16.msra.mxu0 %v2748_v0  ;;  %2112 = vmatpush1.bf16.msra.mxu1 %v2751_v1  ;;  %v1331_v0 = vrot.slane %v1311_v62, %v1310_v47  ;;  %v1335_v1 = vrot.slane %v1315_v63, %v1310_v47 }
 0x303   :  { %2072 = vmatprep.subr.bf16.mxu0 %v2756_v2  ;;  %2113 = vmatprep.subr.bf16.mxu1 %v2759_v3 }
 0x306   :  { %2073 = vmatpush1.bf16.msra.mxu0 %v2754_v4  ;;  %2114 = vmatpush1.bf16.msra.mxu1 %v2757_v5 }
 0x307   :  { %2074 = vmatprep.subr.bf16.mxu0 %v2762_v7  ;;  %2115 = vmatprep.subr.bf16.mxu1 %v2765_v8 }
 0x30a   :  { %2075 = vmatpush1.bf16.msra.mxu0 %v2760_v10  ;;  %2116 = vmatpush1.bf16.msra.mxu1 %v2763_v13 }
 0x30b   :  { %2076 = vmatprep.subr.bf16.mxu0 %v2768_v14  ;;  %2117 = vmatprep.subr.bf16.mxu1 %v2771_v15 }
 0x30e   :  { %2077 = vmatpush1.bf16.msra.mxu0 %v2766_v16  ;;  %2118 = vmatpush1.bf16.msra.mxu1 %v2769_v17  ;;  %v2842_v16 = vld [vmem:[#allocation2] sm:$0xff]  ;;  %v2843_v17 = vld [vmem:[#allocation2 + $0x8] sm:$0xff] }
 0x30f   :  { %2078 = vmatprep.subr.bf16.mxu0 %v2774_v18  ;;  %2119 = vmatprep.subr.bf16.mxu1 %v2777_v19  ;;  %v1323_v19 = vrot.slane %v3052_v12, %v1314_v61 }
 0x312   :  { %2079 = vmatpush1.bf16.msra.mxu0 %v2772_v20  ;;  %2120 = vmatpush1.bf16.msra.mxu1 %v2775_v21  ;;  %v1339_v20 = vrot.slane %v1319_v11, %v1310_v47  ;;  %v1343_v21 = vrot.slane %v1323_v19, %v1310_v47 }
 0x313   :  { %2080 = vmatprep.subr.bf16.mxu0 %v2780_v22  ;;  %2121 = vmatprep.subr.bf16.mxu1 %v2783_v23 }
 0x316   :  { %2081 = vmatpush1.bf16.msra.mxu0 %v2778_v24  ;;  %2122 = vmatpush1.bf16.msra.mxu1 %v2781_v25 }
 0x317   :  { %2082 = vmatprep.subr.bf16.mxu0 %v2786_v26  ;;  %2123 = vmatprep.subr.bf16.mxu1 %v2789_v27 }
 0x31a   :  { %2083 = vmatpush1.bf16.msra.mxu0 %v2784_v28  ;;  %2124 = vmatpush1.bf16.msra.mxu1 %v2787_v29 }
 0x31b   :  { %2084 = vmatprep.subr.bf16.mxu0 %v2792_v30  ;;  %2125 = vmatprep.subr.bf16.mxu1 %v2795_v31 }
 0x31e   :  { %2085 = vmatpush1.bf16.msra.mxu0 %v2790_v32  ;;  %2126 = vmatpush1.bf16.msra.mxu1 %v2793_v33 }
 0x31f   :  { %2086 = vmatprep.subr.bf16.mxu0 %v2798_v34  ;;  %2127 = vmatprep.subr.bf16.mxu1 %v2801_v35  ;;  %v2844_v35 = vld [vmem:[#allocation2 + $0x18] sm:$0xff] }
 0x322   :  { %2087 = vmatpush1.bf16.msra.mxu0 %v2796_v36  ;;  %2128 = vmatpush1.bf16.msra.mxu1 %v2799_v37 }
 0x323   :  { %2088 = vmatprep.subr.bf16.mxu0 %v2804_v38  ;;  %2129 = vmatprep.subr.bf16.mxu1 %v2807_v39 }
 0x326   :  { %2089 = vmatpush1.bf16.msra.mxu0 %v2802_v40  ;;  %2130 = vmatpush1.bf16.msra.mxu1 %v2805_v41 }
 0x327   :  { %2090 = vmatprep.subr.bf16.mxu0 %v2810_v42  ;;  %2131 = vmatprep.subr.bf16.mxu1 %v2813_v48 }
 0x32a   :  { %2091 = vmatpush1.bf16.msra.mxu0 %v2808_v50  ;;  %2132 = vmatpush1.bf16.msra.mxu1 %v2811_v51 }
 0x32b   :  { %2092 = vmatprep.subr.bf16.mxu0 %v2816_v44  ;;  %2133 = vmatprep.subr.bf16.mxu1 %v2819_v49 }
 0x32e   :  { %2093 = vmatpush1.bf16.msra.mxu0 %v2814_v53  ;;  %2134 = vmatpush1.bf16.msra.mxu1 %v2817_v55 }
 0x32f   :  { %2094 = vmatprep.subr.bf16.mxu0 %v2822_v52  ;;  %2135 = vmatprep.subr.bf16.mxu1 %v2825_v56 }
 0x332   :  { %2095 = vmatpush1.bf16.msra.mxu0 %v2820_v54  ;;  %2136 = vmatpush1.bf16.msra.mxu1 %v2823_v57 }
 0x333   :  { %2096 = vmatprep.subr.bf16.mxu0 %v2828_v58  ;;  %2137 = vmatprep.subr.bf16.mxu1 %v2831_v59 }
 0x336   :  { %2097 = vmatpush1.bf16.msra.mxu0 %v2826_v43  ;;  %2138 = vmatpush1.bf16.msra.mxu1 %v2829_v46 }
 0x339   :  { %2099 = vmatmul.mubr.bf16.vlgmr.msra.gmra.mrb[8].mxu0 %v3107_v60  ;;  %2140 = vmatmul.mubr.bf16.vlgmr.msra.gmra.mrb[8].mxu1 %v3109_v45 }
 0x3cc   :  { %v2018_v2 = vpop.f32.mrb[4].mxu0  ;;  %v2059_v3 = vpop.f32.mrb[4].mxu1 }
 0x3cd   :  { %v2019_v4 = vadd.f32 %v2018_v2, %v1331_v0  ;;  %v2020_v5 = vpop.f32.mrb[5].mxu0  ;;  %v2061_v7 = vpop.f32.mrb[5].mxu1 }
 0x3ce   :  { %v2021_v8 = vadd.f32 %v2020_v5, %v1335_v1  ;;  %v2022_v10 = vpop.f32.mrb[6].mxu0  ;;  %v2063_v60 = vpop.f32.mrb[6].mxu1 }
 0x3cf   :  { %v2060_v13 = vadd.f32 %v2059_v3, %v2019_v4  ;;  %v2023_v45 = vpop.f32.mrb[7].mxu0  ;;  %v2064_v14 = vpop.f32.mrb[7].mxu1 }
 0x3d0   :  { %v2062_v15 = vadd.f32 %v2061_v7, %v2021_v8 }
 0x3d1   :  { %v2148_v9 = vadd.f32 %v2842_v16, %v2060_v13 }
 0x3d2   :  { %v2149_v18 = vadd.f32 %v2843_v17, %v2062_v15 }
 0x3d3   :  { %2152 = vst [vmem:[#allocation10] sm:$0xff] %v2148_v9 }
 0x3d4   :  { %2153 = vst [vmem:[#allocation10 + $0x8] sm:$0xff] %v2149_v18 }
 0x40c   :  { %v2100_v22 = vpop.f32.mrb[8].mxu0  ;;  %v2141_v23 = vpop.f32.mrb[8].mxu1 }
 0x40d   :  { %v2101_v24 = vadd.f32 %v2100_v22, %v1339_v20  ;;  %v2102_v25 = vpop.f32.mrb[9].mxu0  ;;  %v2143_v26 = vpop.f32.mrb[9].mxu1 }
 0x40e   :  { %v2103_v27 = vadd.f32 %v2102_v25, %v1343_v21  ;;  %v2104_v28 = vpop.f32.mrb[10].mxu0  ;;  %v2145_v29 = vpop.f32.mrb[10].mxu1 }
 0x40f   :  { %v2142_v30 = vadd.f32 %v2141_v23, %v2101_v24  ;;  %v2105_v31 = vpop.f32.mrb[11].mxu0  ;;  %v2146_v32 = vpop.f32.mrb[11].mxu1 }
 0x410   :  { %v2144_v33 = vadd.f32 %v2143_v26, %v2103_v27 }
 0x411   :  { %v2150_v34 = vadd.f32 %v2142_v30, %v3043_v6 }
 0x412   :  { %v2151_v12 = vadd.f32 %v2844_v35, %v2144_v33 }
 0x413   :  { %2154 = vst [vmem:[#allocation10 + $0x10] sm:$0xff] %v2150_v34 }
 0x414   :  { %2155 = vst [vmem:[#allocation10 + $0x18] sm:$0xff] %v2151_v12 }
 0x415   :  { %2944 = shalt.err (!%p2941_p8)
}
 0x416   :  { %s2945_s13 = scalar_lea.hbm %s3138_s4, 512 }
 0x417   :  { %p2946_p9 = scmp.ne.s32.totalorder %s3138_s4, %s2945_s13  ;;  %p2949_p10 = scmp.lt.u32.totalorder %s2945_s13, %s3138_s4 }
 0x419   :  { %p2951_p11 = pnand %p2949_p10, %p2946_p9 }
 0x41b   :  { %2954 = shalt.err (!%p2951_p11)
}
 0x41c   :  { %2165 = dma.vmem_to_hbm [thread:$0]  %s2163_s10, 512, %s3138_s4, [#allocation4]  }
 0x41d   :  { %2961 = dma.done.wait [#allocation4], 512  }
 0x41e   :  { %2962 = vsyncadd [#allocation4], 4294966784 }
 0x41f   :  { %2169 = vsyncpa [#allocation3], 1 }
 0x420   :  { %2170 = vsyncpa [#allocation6], 1 }
 0x421   :  { %2171 = vsyncpa [#allocation9], 1 }
 0x422   :  { %2172 = vsyncpa [#allocation4], 1 }

</bundles_post_ra>
